<compile_context>
chip_gen: v5e
topology: v5e:2x2
jax: 0.10.0
libtpu: 0.0.40
codegen_flags: <defaults>
</compile_context>

<pallas_src>
import jax
import jax.numpy as jnp
from jax import lax
from jax.experimental import pallas as pl
from jax.experimental.pallas import tpu as pltpu


def _pconv_kernel(px_ref, inv_ref, w_ref, b_ref, out_ref):
    # input_conv(input*mask) minus its bias == matmul of masked patches.
    raw = jnp.dot(px_ref[...], w_ref[...],
                  preferred_element_type=jnp.float32)         # (tm, tn) f32
    inv = inv_ref[...]                                        # (tm, 1)  f32, 0 at holes
    out = raw * inv + b_ref[...]        # (output - bias)/mask_sum + bias
    out = jnp.where(inv == 0.0, 0.0, out)                     # masked_fill_(holes, 0.0)
    out_ref[...] = out.astype(out_ref.dtype)


def _im2col(x, kh, kw, stride, padding):
    # x: (N, C, H, W) -> (N*H_out*W_out, C*kh*kw); feature order matches the
    # PyTorch Conv2d weight flattening (C, kh, kw).
    N, C, H, W = x.shape
    xp = jnp.pad(x, ((0, 0), (0, 0), (padding, padding), (padding, padding)))
    H_out = (H + 2 * padding - kh) // stride + 1
    W_out = (W + 2 * padding - kw) // stride + 1
    cols = []
    for i in range(kh):
        for j in range(kw):
            cols.append(xp[:, :, i:i + stride * H_out:stride, j:j + stride * W_out:stride])
    p = jnp.stack(cols, axis=0).reshape(kh, kw, N, C, H_out, W_out)
    p = p.transpose(2, 4, 5, 3, 0, 1)                         # (N, H_out, W_out, C, kh, kw)
    return p.reshape(N * H_out * W_out, C * kh * kw), (N, H_out, W_out)


def partial_conv(x, mask, weight, bias, *, stride=1, padding=0,
                 tm=512, compute_dtype=jnp.bfloat16, out_dtype=None,
                 weight_resident_bytes=8 << 20, vmem_buffer_budget=40 << 20):
    """x, mask: (N, C_in, H, W) NCHW; weight: (C_out, C_in, kh, kw); bias: (C_out,)."""
    C_out, C_in, kh, kw = weight.shape
    N, _, H, W = x.shape
    H_out = (H + 2 * padding - kh) // stride + 1
    W_out = (W + 2 * padding - kw) // stride + 1
    M = N * H_out * W_out
    K = C_in * kh * kw
    out_dtype = x.dtype if out_dtype is None else out_dtype
    out_isize = jnp.dtype(out_dtype).itemsize

    # Masked-input patches: cast to bf16 *before* im2col so every materialized
    # intermediate of the dominant (M, K) stream is 2-byte.
    px, _ = _im2col((x * mask).astype(compute_dtype), kh, kw, stride, padding)  # (M, K)

    # Per-window mask sum == mask_conv(mask) with all-ones weights (identical
    # for every output channel).  Precompute its reciprocal with holes -> 0 so
    # the kernel epilogue is a pure FMA + select.
    msum_sp = lax.reduce_window(
        jnp.sum(mask.astype(jnp.float32), axis=1),             # (N, H, W)
        jnp.float32(0.0), lax.add,
        window_dimensions=(1, kh, kw),
        window_strides=(1, stride, stride),
        padding=[(0, 0), (padding, padding), (padding, padding)],
    )                                                          # (N, H_out, W_out)
    hole_sp = msum_sp == 0.0                                   # no_update_holes
    inv_sp = jnp.where(hole_sp, 0.0, 1.0 / jnp.where(hole_sp, 1.0, msum_sp))
    inv = inv_sp.reshape(M, 1)

    # Lane-align the contraction dim: pad K up to a multiple of 128 (zeros).
    K_pad = -(-K // 128) * 128

    # Output-channel tiling: keep the whole weight VMEM-resident when it fits
    # (constant block index -> single DMA for all grid steps), else tile.
    Cp = -(-C_out // 128) * 128
    if K_pad * Cp * 2 <= weight_resident_bytes:
        tn = Cp
    else:
        tn = 256 if Cp % 256 == 0 else 128
        Cp = -(-C_out // tn) * tn

    # Row tile: clamp to data, then shrink until the double buffers fit a
    # v7x-safe VMEM budget (64 MiB/TC there; v5e scoped default is only 16 MiB
    # so we always pass an explicit vmem_limit_bytes below).
    tm = min(tm, -(-M // 8) * 8)
    tm = max(8, -(-tm // 8) * 8)

    def _buf_bytes(tm_):
        # double-buffered px + weight + inv(lane-padded to 128) + bias + out
        return 2 * (tm_ * K_pad * 2 + K_pad * tn * 2 + tm_ * 128 * 4
                    + 8 * tn * 4 + tm_ * tn * out_isize)

    while _buf_bytes(tm) > vmem_buffer_budget and tm > 64:
        tm = max(64, -(-(tm // 2) // 8) * 8)
    M_pad = -(-M // tm) * tm

    # Pad rows (padded rows have inv == 0 -> treated as holes -> zeros) and K.
    px = jnp.pad(px, ((0, M_pad - M), (0, K_pad - K)))
    inv = jnp.pad(inv, ((0, M_pad - M), (0, 0)))

    w2 = weight.reshape(C_out, K).T                            # (K, C_out)
    w2 = jnp.pad(w2, ((0, K_pad - K), (0, Cp - C_out))).astype(compute_dtype)
    b2 = jnp.pad(bias.astype(jnp.float32), (0, Cp - C_out)).reshape(1, Cp)

    vmem_limit = int(min(56 << 20, max(32 << 20, _buf_bytes(tm) + (16 << 20))))
    cost = pl.CostEstimate(
        flops=2 * M_pad * K_pad * Cp,
        transcendentals=0,
        bytes_accessed=(M_pad * K_pad * 2 + K_pad * Cp * 2 + M_pad * 4
                        + Cp * 4 + M_pad * Cp * out_isize),
    )

    out_flat = pl.pallas_call(
        _pconv_kernel,
        out_shape=jax.ShapeDtypeStruct((M_pad, Cp), out_dtype),
        grid_spec=pltpu.PrefetchScalarGridSpec(
            num_scalar_prefetch=0,
            grid=(M_pad // tm, Cp // tn),
            in_specs=[pl.BlockSpec((tm, K_pad), lambda i, j: (i, 0)),
                      pl.BlockSpec((tm, 1), lambda i, j: (i, 0)),
                      pl.BlockSpec((K_pad, tn), lambda i, j: (0, j)),
                      pl.BlockSpec((1, tn), lambda i, j: (0, j))],
            out_specs=pl.BlockSpec((tm, tn), lambda i, j: (i, j))),
        compiler_params=pltpu.CompilerParams(
            dimension_semantics=("parallel", "arbitrary"),
            vmem_limit_bytes=vmem_limit),
        cost_estimate=cost,
    )(px, inv, w2, b2)

    out = out_flat[:M, :C_out].reshape(N, H_out, W_out, C_out).transpose(0, 3, 1, 2)

    # new_mask is channel-constant: just (mask window sum != 0), broadcast.
    valid = (~hole_sp).astype(out_dtype)                       # (N, H_out, W_out)
    new_mask = jnp.broadcast_to(valid[:, None, :, :], (N, C_out, H_out, W_out))
    return out, new_mask


def partial_conv_ref(x, mask, weight, bias, *, stride=1, padding=0):
    # Pure-JAX reference mirroring the PyTorch forward exactly (f32).
    dn = ('NCHW', 'OIHW', 'NCHW')
    conv = lambda a, w: lax.conv_general_dilated(
        a, w, (stride, stride), [(padding, padding), (padding, padding)],
        dimension_numbers=dn, precision=lax.Precision.HIGHEST)
    out = conv(x * mask, weight) + bias.reshape(1, -1, 1, 1)
    out_bias = jnp.broadcast_to(bias.reshape(1, -1, 1, 1), out.shape)
    om = conv(mask, jnp.ones_like(weight))
    hole = om == 0
    msum = jnp.where(hole, 1.0, om)
    out_pre = (out - out_bias) / msum + out_bias
    out = jnp.where(hole, 0.0, out_pre)
    new_mask = jnp.where(hole, 0.0, jnp.ones_like(out))
    return out, new_mask


if __name__ == "__main__":
    N, C_in, C_out, H, W = 2, 4, 8, 16, 16
    kh = kw = 3
    stride, padding = 1, 1

    key = jax.random.PRNGKey(0)
    kx, km, kw_key, kb = jax.random.split(key, 4)

    x = jax.random.normal(kx, (N, C_in, H, W), dtype=jnp.float32)
    # Binary mask with a guaranteed hole region (so no_update_holes is non-trivial).
    mask = (jax.random.uniform(km, (N, C_in, H, W)) > 0.5).astype(jnp.float32)
    mask = mask.at[:, :, 4:9, 4:9].set(0.0)

    # Kaiming-normal weights (fan_in mode, gain sqrt(2)), as in weights_init('kaiming').
    fan_in = C_in * kh * kw
    weight = jax.random.normal(kw_key, (C_out, C_in, kh, kw), dtype=jnp.float32) * jnp.sqrt(2.0 / fan_in)
    # Module init zeroes the bias; use small deterministic nonzero values to exercise the bias path.
    bias = 0.05 * jnp.arange(C_out, dtype=jnp.float32)

    out, new_mask = partial_conv(x, mask, weight, bias, stride=stride, padding=padding)
    jax.block_until_ready((out, new_mask))

    out_ref, nm_ref = partial_conv_ref(x, mask, weight, bias, stride=stride, padding=padding)
    assert out.shape == (N, C_out, H, W) and new_mask.shape == (N, C_out, H, W)
    # Tolerance loosened vs. the f32 reference because the patch/weight stream
    # is bf16 on the MXU (f32 accumulation).
    assert jnp.allclose(out, out_ref, atol=3e-2, rtol=3e-2), "output mismatch"
    assert jnp.allclose(new_mask, nm_ref), "new_mask mismatch"

    print("KERNEL_OK")
</pallas_src>

<mosaic_0001>
module attributes {stable_mosaic.version = 11 : i64} {
  func.func @_pconv_kernel(%arg0: i32, %arg1: i32, %arg2: memref<512x128xbf16, #tpu.memory_space<vmem>>, %arg3: memref<512x1xf32, #tpu.memory_space<vmem>>, %arg4: memref<128x128xbf16, #tpu.memory_space<vmem>>, %arg5: memref<1x128xf32, #tpu.memory_space<vmem>>, %arg6: memref<512x128xf32, #tpu.memory_space<vmem>>) attributes {dimension_semantics = [#tpu.dimension_semantics<parallel>, #tpu.dimension_semantics<arbitrary>], iteration_bounds = array<i64: 1, 1>, scalar_prefetch = 0 : i64, scratch_operands = 0 : i64, tpu.core_type = #tpu.core_type<tc>, window_params = [{transform_indices = @transform_0, window_bounds = array<i64: 512, 128>}, {transform_indices = @transform_1, window_bounds = array<i64: 512, 1>}, {transform_indices = @transform_2, window_bounds = array<i64: 128, 128>}, {transform_indices = @transform_3, window_bounds = array<i64: 1, 128>}, {transform_indices = @transform_4, window_bounds = array<i64: 512, 128>}]} {
    %c0 = arith.constant 0 : index
    %c0_0 = arith.constant 0 : index
    %0 = vector.load %arg2[%c0, %c0_0] : memref<512x128xbf16, #tpu.memory_space<vmem>>, vector<512x128xbf16>
    %c0_1 = arith.constant 0 : index
    %c0_2 = arith.constant 0 : index
    %1 = vector.load %arg4[%c0_1, %c0_2] : memref<128x128xbf16, #tpu.memory_space<vmem>>, vector<128x128xbf16>
    %cst = arith.constant dense<0.000000e+00> : vector<512x128xf32>
    %2 = tpu.matmul %0, %1, %cst {dimension_numbers = #tpu.dot_dimension_numbers<[1], [0], [0], [1], [0, 0, 1, 1], [], []>} : vector<512x128xbf16>, vector<128x128xbf16>, vector<512x128xf32> -> vector<512x128xf32>
    %c0_3 = arith.constant 0 : index
    %c0_4 = arith.constant 0 : index
    %3 = vector.load %arg3[%c0_3, %c0_4] : memref<512x1xf32, #tpu.memory_space<vmem>>, vector<512x1xf32>
    %4 = vector.broadcast %3 : vector<512x1xf32> to vector<512x128xf32>
    %5 = arith.mulf %2, %4 : vector<512x128xf32>
    %c0_5 = arith.constant 0 : index
    %c0_6 = arith.constant 0 : index
    %6 = vector.load %arg5[%c0_5, %c0_6] : memref<1x128xf32, #tpu.memory_space<vmem>>, vector<1x128xf32>
    %7 = vector.broadcast %6 : vector<1x128xf32> to vector<512x128xf32>
    %8 = arith.addf %5, %7 : vector<512x128xf32>
    %cst_7 = arith.constant 0.000000e+00 : f32
    %9 = vector.broadcast %cst_7 : f32 to vector<512x1xf32>
    %10 = arith.cmpf oeq, %3, %9 : vector<512x1xf32>
    %cst_8 = arith.constant 0.000000e+00 : f32
    %11 = vector.shape_cast %10 : vector<512x1xi1> to vector<512x1xi1>
    %12 = vector.broadcast %11 : vector<512x1xi1> to vector<512x128xi1>
    %13 = vector.broadcast %cst_8 : f32 to vector<512x128xf32>
    %14 = arith.select %12, %13, %8 : vector<512x128xi1>, vector<512x128xf32>
    %c0_9 = arith.constant 0 : index
    %c0_10 = arith.constant 0 : index
    %15 = vector.load %arg6[%c0_9, %c0_10] : memref<512x128xf32, #tpu.memory_space<vmem>>, vector<512x128xf32>
    tpu.vector_store %arg6[%c0_9, %c0_10], %14 {strides = array<i32>} : memref<512x128xf32, #tpu.memory_space<vmem>>, vector<512x128xf32>,
    return
  }
  func.func @transform_0(%arg0: i32, %arg1: i32) -> (i32, i32) {
    %c0_i32 = arith.constant 0 : i32
    %c0_i32_0 = arith.constant 0 : i32
    return %arg0, %c0_i32 : i32, i32
  }
  func.func @transform_1(%arg0: i32, %arg1: i32) -> (i32, i32) {
    %c0_i32 = arith.constant 0 : i32
    %c0_i32_0 = arith.constant 0 : i32
    return %arg0, %c0_i32 : i32, i32
  }
  func.func @transform_2(%arg0: i32, %arg1: i32) -> (i32, i32) {
    %c0_i32 = arith.constant 0 : i32
    %c0_i32_0 = arith.constant 0 : i32
    return %c0_i32, %arg1 : i32, i32
  }
  func.func @transform_3(%arg0: i32, %arg1: i32) -> (i32, i32) {
    %c0_i32 = arith.constant 0 : i32
    %c0_i32_0 = arith.constant 0 : i32
    return %c0_i32, %arg1 : i32, i32
  }
  func.func @transform_4(%arg0: i32, %arg1: i32) -> (i32, i32) {
    %c0_i32 = arith.constant 0 : i32
    return %arg0, %arg1 : i32, i32
  }
}

</mosaic_0001>

<bundles_post_ra>
// kernel: tpu_custom_call.1
= control target key start
LH: loop header
LB: loop body
LE: loop exit
PB: predicated region body
PF: predicated region fallthrough
CT: control target
= control target key end

     0   :  { %v2861_v3 = vmov 0   ;;  %s2856_s0 = inlined_call_operand.vmem [shape: bf16[512,128], index: 0, kind: input, shape index: {}]   ;;  %s2857_s1 = inlined_call_operand.vmem [shape: f32[512,1], index: 1, kind: input, shape index: {}]   ;;  %s2858_s2 = inlined_call_operand.vmem [shape: bf16[128,128], index: 2, kind: input, shape index: {}]   ;;  %s2859_s3 = inlined_call_operand.vmem [shape: f32[1,128], index: 3, kind: input, shape index: {}]   ;;  %s2860_s4 = inlined_call_operand.hbm [shape: f32[512,128], index: 4, kind: output, shape index: {}]  }
   0x1   :  { %v1843_v0 = vld [vmem:[%s2857_s1 + $0x20] sm:$0xff]  ;;  %v1848_v1 = vld [vmem:[%s2857_s1 + $0x10] sm:$0xff]  ;;  %1783 = vset.pattern.permute.xlu2 %v2861_v3  ;;  %1782 = vset.pattern.permute.xlu1 %v2861_v3  ;;  %v1752_v4 = vld [vmem:[%s2858_s2 + $0x38] sm:$0xff] }
   0x2   :  { %v1853_v2 = vld [vmem:[%s2857_s1] sm:$0xff]  ;;  %1781 = vset.pattern.permute.xlu0 %v2861_v3  ;;  %593 = vperm.xlu2 %1783, %v1843_v0   ;;  %v1751_v5 = vld [vmem:[%s2858_s2 + $0x30] sm:$0xff]  ;;  %v1870_v6 = vld [vmem:[%s2857_s1 + $0x28] sm:$0xff] }
   0x3   :  { %583 = vperm.xlu1 %1782, %v1848_v1   ;;  %573 = vperm.xlu0 %1781, %v1853_v2   ;;  %v1875_v7 = vld [vmem:[%s2857_s1 + $0x18] sm:$0xff]  ;;  %v1880_v8 = vld [vmem:[%s2857_s1 + $0x8] sm:$0xff] }
   0x4   :  { %338 = vmatpush.bf16.msra.mxu0 %v1752_v4  ;;  %1753 = vmatpush.bf16.msra.mxu1 %v1752_v4  ;;  %v1750_v9 = vld [vmem:[%s2858_s2 + $0x28] sm:$0xff] }
   0x5   :  { %1754 = vmatpush.bf16.msra.mxu2 %v1752_v4  ;;  %1755 = vmatpush.bf16.msra.mxu3 %v1752_v4 }
   0x8   :  { %339 = vmatpush.bf16.msra.mxu0 %v1751_v5  ;;  %1756 = vmatpush.bf16.msra.mxu1 %v1751_v5 }
   0x9   :  { %1757 = vmatpush.bf16.msra.mxu2 %v1751_v5  ;;  %1758 = vmatpush.bf16.msra.mxu3 %v1751_v5 }
   0xa   :  { %9 = vsyncpa [#allocation3], 0  ;;  %598 = vperm.xlu2 %1783, %v1870_v6   ;;  %v1749_v10 = vld [vmem:[%s2858_s2 + $0x20] sm:$0xff]  ;;  %v1899_v12 = vld [vmem:[%s2857_s1 + $0x38] sm:$0xff]  ;;  %vm1024_vm0 = vcmp.eq.f32.partialorder %v1880_v8, 0.0  ;;  %vm1023_vm1 = vcmp.eq.f32.partialorder %v1853_v2, 0.0 }
   0xb   :  { %588 = vperm.xlu1 %1782, %v1875_v7   ;;  %578 = vperm.xlu0 %1781, %v1880_v8   ;;  %v1894_v11 = vld [vmem:[%s2857_s1 + $0x40] sm:$0xff]  ;;  %v1904_v13 = vld [vmem:[%s2857_s1 + $0x30] sm:$0xff]  ;;  %v1748_v14 = vld [vmem:[%s2858_s2 + $0x18] sm:$0xff]  ;;  %vm1027_vm2 = vcmp.eq.f32.partialorder %v1843_v0, 0.0  ;;  %vm1025_vm3 = vcmp.eq.f32.partialorder %v1848_v1, 0.0  ;;  %vm1026_vm4 = vcmp.eq.f32.partialorder %v1875_v7, 0.0 }
   0xc   :  { %340 = vmatpush.bf16.msra.mxu0 %v1750_v9  ;;  %1759 = vmatpush.bf16.msra.mxu1 %v1750_v9  ;;  %v1747_v15 = vld [vmem:[%s2858_s2 + $0x10] sm:$0xff]  ;;  %v1918_v16 = vld [vmem:[%s2857_s1 + $0x58] sm:$0xff]  ;;  %v1928_v18 = vld [vmem:[%s2857_s1 + $0x48] sm:$0xff]  ;;  %vm1030_vm5 = vcmp.eq.f32.partialorder %v1899_v12, 0.0  ;;  %vm1028_vm6 = vcmp.eq.f32.partialorder %v1870_v6, 0.0  ;;  %vm1029_vm7 = vcmp.eq.f32.partialorder %v1904_v13, 0.0 }
   0xd   :  { %1760 = vmatpush.bf16.msra.mxu2 %v1750_v9  ;;  %1761 = vmatpush.bf16.msra.mxu3 %v1750_v9  ;;  %v1923_v17 = vld [vmem:[%s2857_s1 + $0x50] sm:$0xff]  ;;  %v1746_v19 = vld [vmem:[%s2858_s2 + $0x8] sm:$0xff]  ;;  %v1745_v20 = vld [vmem:[%s2858_s2] sm:$0xff]  ;;  %vm1031_vm9 = vcmp.eq.f32.partialorder %v1894_v11, 0.0  ;;  %vm1032_vm10 = vcmp.eq.f32.partialorder %v1928_v18, 0.0  ;;  %vm1034_vm12 = vcmp.eq.f32.partialorder %v1918_v16, 0.0 }
   0xe   :  { %v1942_v21 = vld [vmem:[%s2857_s1 + $0x70] sm:$0xff]  ;;  %v1947_v22 = vld [vmem:[%s2857_s1 + $0x68] sm:$0xff]  ;;  %v1952_v23 = vld [vmem:[%s2857_s1 + $0x60] sm:$0xff]  ;;  %vm1033_vm8 = vcmp.eq.f32.partialorder %v1923_v17, 0.0  ;;  %s1541_s11 = sshll.u32 %s2860_s4, 4  ;;  %s1813_s12 = smov 128   ;;  %s1542_s11 = int_to_ptr.hbm [resolvable:$true] %s1541_s11 }
   0xf   :  { %v1713_v24 = vld [vmem:[%s2856_s0] sm:$0xff]  ;;  %v1972_v28 = vld [vmem:[%s2857_s1 + $0x88] sm:$0xff]  ;;  %v1982_v30 = vld [vmem:[%s2857_s1 + $0x78] sm:$0xff]  ;;  %vm1036_vm11 = vcmp.eq.f32.partialorder %v1947_v22, 0.0  ;;  %vm1035_vm13 = vcmp.eq.f32.partialorder %v1952_v23, 0.0  ;;  %vm1037_vm15 = vcmp.eq.f32.partialorder %v1942_v21, 0.0 }
  0x10   :  { %341 = vmatpush.bf16.msra.mxu0 %v1749_v10  ;;  %1762 = vmatpush.bf16.msra.mxu1 %v1749_v10  ;;  %v1721_v25 = vld [vmem:[%s2856_s0 + $0x40] sm:$0xff]  ;;  %v1995_v32 = vld [vmem:[%s2857_s1 + $0x98] sm:$0xff]  ;;  %v2000_v33 = vld [vmem:[%s2857_s1 + $0x90] sm:$0xff]  ;;  %s1814_s13 = smov 8  }
  0x11   :  { %1763 = vmatpush.bf16.msra.mxu2 %v1749_v10  ;;  %1764 = vmatpush.bf16.msra.mxu3 %v1749_v10  ;;  %v1729_v26 = vld [vmem:[%s2856_s0 + $0x80] sm:$0xff]  ;;  %v1714_v34 = vld [vmem:[%s2856_s0 + $0x8] sm:$0xff]  ;;  %v2020_v38 = vld [vmem:[%s2857_s1 + $0xb8] sm:$0xff] }
  0x12   :  { %613 = vperm.xlu2 %1783, %v1894_v11   ;;  %v1737_v27 = vld [vmem:[%s2856_s0 + $0xc0] sm:$0xff]  ;;  %v1722_v35 = vld [vmem:[%s2856_s0 + $0x48] sm:$0xff]  ;;  %v2025_v39 = vld [vmem:[%s2857_s1 + $0xb0] sm:$0xff] }
  0x13   :  { %608 = vperm.xlu1 %1782, %v1899_v12   ;;  %603 = vperm.xlu0 %1781, %v1904_v13   ;;  %v1977_v29 = vld [vmem:[%s2857_s1 + $0x80] sm:$0xff]  ;;  %v1730_v36 = vld [vmem:[%s2856_s0 + $0x88] sm:$0xff]  ;;  %v2038_v41 = vld [vmem:[%s2857_s1 + $0xd0] sm:$0xff] }
  0x14   :  { %342 = vmatpush.bf16.msra.mxu0 %v1748_v14  ;;  %1765 = vmatpush.bf16.msra.mxu1 %v1748_v14  ;;  %v1990_v31 = vld [vmem:[%s2857_s1 + $0xa0] sm:$0xff]  ;;  %v1738_v37 = vld [vmem:[%s2856_s0 + $0xc8] sm:$0xff]  ;;  %v1715_v44 = vld [vmem:[%s2856_s0 + $0x10] sm:$0xff]  ;;  %vm1039_vm14 = vcmp.eq.f32.partialorder %v1977_v29, 0.0 }
  0x15   :  { %1766 = vmatpush.bf16.msra.mxu2 %v1748_v14  ;;  %1767 = vmatpush.bf16.msra.mxu3 %v1748_v14  ;;  %v2030_v40 = vld [vmem:[%s2857_s1 + $0xa8] sm:$0xff]  ;;  %v2048_v43 = vld [vmem:[%s2857_s1 + $0xc0] sm:$0xff]  ;;  %v1723_v45 = vld [vmem:[%s2856_s0 + $0x50] sm:$0xff] }
  0x16   :  { %v2043_v42 = vld [vmem:[%s2857_s1 + $0xc8] sm:$0xff]  ;;  %v1731_v46 = vld [vmem:[%s2856_s0 + $0x90] sm:$0xff]  ;;  %v2073_v49 = vld [vmem:[%s2857_s1 + $0xe0] sm:$0xff] }
  0x17   :  { %v1739_v47 = vld [vmem:[%s2856_s0 + $0xd0] sm:$0xff]  ;;  %v2068_v48 = vld [vmem:[%s2857_s1 + $0xe8] sm:$0xff]  ;;  %v2078_v50 = vld [vmem:[%s2857_s1 + $0xd8] sm:$0xff] }
  0x18   :  { %343 = vmatpush.bf16.msra.mxu0 %v1747_v15  ;;  %1768 = vmatpush.bf16.msra.mxu1 %v1747_v15  ;;  %v2086_v51 = vld [vmem:[%s2857_s1 + $0x100] sm:$0xff]  ;;  %v2091_v52 = vld [vmem:[%s2857_s1 + $0xf8] sm:$0xff]  ;;  %v2096_v53 = vld [vmem:[%s2857_s1 + $0xf0] sm:$0xff] }
  0x19   :  { %1769 = vmatpush.bf16.msra.mxu2 %v1747_v15  ;;  %1770 = vmatpush.bf16.msra.mxu3 %v1747_v15  ;;  %v1716_v54 = vld [vmem:[%s2856_s0 + $0x18] sm:$0xff]  ;;  %v2121_v59 = vld [vmem:[%s2857_s1 + $0x110] sm:$0xff]  ;;  %v2126_v60 = vld [vmem:[%s2857_s1 + $0x108] sm:$0xff] }
  0x1a   :  { %628 = vperm.xlu2 %1783, %v1918_v16   ;;  %v1724_v55 = vld [vmem:[%s2856_s0 + $0x58] sm:$0xff]  ;;  %v2136_v62 = vld [vmem:[%s2857_s1 + $0x130] sm:$0xff]  ;;  %v2141_v63 = vld [vmem:[%s2857_s1 + $0x128] sm:$0xff] }
  0x1b   :  { %623 = vperm.xlu1 %1782, %v1923_v17   ;;  %618 = vperm.xlu0 %1781, %v1928_v18   ;;  %v1732_v56 = vld [vmem:[%s2856_s0 + $0x98] sm:$0xff]  ;;  %v2146_v4 = vld [vmem:[%s2857_s1 + $0x120] sm:$0xff]  ;;  %v1743_v3 = vld [vmem:[%s2856_s0 + $0xf0] sm:$0xff] }
  0x1c   :  { %344 = vmatpush.bf16.msra.mxu0 %v1746_v19  ;;  %1771 = vmatpush.bf16.msra.mxu1 %v1746_v19  ;;  %v1740_v57 = vld [vmem:[%s2856_s0 + $0xd8] sm:$0xff]  ;;  %v1717_v5 = vld [vmem:[%s2856_s0 + $0x20] sm:$0xff] }
  0x1d   :  { %1772 = vmatpush.bf16.msra.mxu2 %v1746_v19  ;;  %1773 = vmatpush.bf16.msra.mxu3 %v1746_v19  ;;  %v2116_v58 = vld [vmem:[%s2857_s1 + $0x118] sm:$0xff]  ;;  %v1725_v9 = vld [vmem:[%s2856_s0 + $0x60] sm:$0xff]  ;;  %v2168_v19 = vld [vmem:[%s2857_s1 + $0x148] sm:$0xff] }
  0x1e   :  { %v1733_v10 = vld [vmem:[%s2856_s0 + $0xa0] sm:$0xff]  ;;  %2886 = vst [vmem:[#allocation6_spill] sm:$0xff] %v2168_v19 }
  0x1f   :  { %v1741_v14 = vld [vmem:[%s2856_s0 + $0xe0] sm:$0xff] }
  0x20   :  { %345 = vmatpush.bf16.msra.mxu0 %v1745_v20  ;;  %1774 = vmatpush.bf16.msra.mxu1 %v1745_v20 }
  0x21   :  { %1775 = vmatpush.bf16.msra.mxu2 %v1745_v20  ;;  %1776 = vmatpush.bf16.msra.mxu3 %v1745_v20  ;;  %v2173_v20 = vld [vmem:[%s2857_s1 + $0x140] sm:$0xff] }
  0x22   :  { %643 = vperm.xlu2 %1783, %v1942_v21  }
  0x23   :  { %638 = vperm.xlu1 %1782, %v1947_v22   ;;  %633 = vperm.xlu0 %1781, %v1952_v23  }
  0x24   :  { %346 = vmatmul.bf16.vlgmr.msra.gmra.mxu0 %v1713_v24  ;;  %386 = vmatmul.bf16.vlgmr.msra.gmra.mxu1 %v1721_v25  ;;  %v2178_v24 = vld [vmem:[%s2857_s1 + $0x138] sm:$0xff] }
  0x25   :  { %426 = vmatmul.bf16.vlgmr.msra.gmra.mxu2 %v1729_v26  ;;  %466 = vmatmul.bf16.vlgmr.msra.gmra.mxu3 %v1737_v27  ;;  %v2188_v26 = vld [vmem:[%s2857_s1 + $0x160] sm:$0xff]  ;;  %v2193_v27 = vld [vmem:[%s2857_s1 + $0x158] sm:$0xff] }
  0x26   :  { %2888 = vst [vmem:[#allocation8_spill] sm:$0xff] %v2188_v26 }
  0x2a   :  { %658 = vperm.xlu2 %1783, %v1972_v28  }
  0x2b   :  { %653 = vperm.xlu1 %1782, %v1977_v29   ;;  %648 = vperm.xlu0 %1781, %v1982_v30  }
  0x32   :  { %673 = vperm.xlu2 %1783, %v1990_v31  }
  0x33   :  { %668 = vperm.xlu1 %1782, %v1995_v32   ;;  %663 = vperm.xlu0 %1781, %v2000_v33  }
  0x34   :  { %351 = vmatmul.bf16.gmra.mxu0 %v1714_v34  ;;  %391 = vmatmul.bf16.gmra.mxu1 %v1722_v35  ;;  %v2198_v34 = vld [vmem:[%s2857_s1 + $0x150] sm:$0xff]  ;;  %v1718_v35 = vld [vmem:[%s2856_s0 + $0x28] sm:$0xff] }
  0x35   :  { %431 = vmatmul.bf16.gmra.mxu2 %v1730_v36  ;;  %471 = vmatmul.bf16.gmra.mxu3 %v1738_v37  ;;  %2889 = vst [vmem:[#allocation9_spill] sm:$0xff] %v2198_v34  ;;  %v1726_v36 = vld [vmem:[%s2856_s0 + $0x68] sm:$0xff] }
  0x36   :  { %v1734_v37 = vld [vmem:[%s2856_s0 + $0xa8] sm:$0xff] }
  0x3a   :  { %688 = vperm.xlu2 %1783, %v2020_v38  }
  0x3b   :  { %683 = vperm.xlu1 %1782, %v2025_v39   ;;  %678 = vperm.xlu0 %1781, %v2030_v40  }
  0x42   :  { %703 = vperm.xlu2 %1783, %v2038_v41  }
  0x43   :  { %698 = vperm.xlu1 %1782, %v2043_v42   ;;  %693 = vperm.xlu0 %1781, %v2048_v43  }
  0x44   :  { %356 = vmatmul.bf16.gmra.mxu0 %v1715_v44  ;;  %396 = vmatmul.bf16.gmra.mxu1 %v1723_v45  ;;  %v1742_v44 = vld [vmem:[%s2856_s0 + $0xe8] sm:$0xff] }
  0x45   :  { %436 = vmatmul.bf16.gmra.mxu2 %v1731_v46  ;;  %476 = vmatmul.bf16.gmra.mxu3 %v1739_v47 }
  0x4a   :  { %718 = vperm.xlu2 %1783, %v2068_v48  }
  0x4b   :  { %713 = vperm.xlu1 %1782, %v2073_v49   ;;  %708 = vperm.xlu0 %1781, %v2078_v50  }
  0x52   :  { %733 = vperm.xlu2 %1783, %v2086_v51  }
  0x53   :  { %728 = vperm.xlu1 %1782, %v2091_v52   ;;  %723 = vperm.xlu0 %1781, %v2096_v53  }
  0x54   :  { %361 = vmatmul.bf16.gmra.mxu0 %v1716_v54  ;;  %401 = vmatmul.bf16.gmra.mxu1 %v1724_v55  ;;  %v2224_v54 = vld [vmem:[%s2857_s1 + $0x178] sm:$0xff]  ;;  %v2229_v55 = vld [vmem:[%s2857_s1 + $0x170] sm:$0xff] }
  0x55   :  { %441 = vmatmul.bf16.gmra.mxu2 %v1732_v56  ;;  %481 = vmatmul.bf16.gmra.mxu3 %v1740_v57  ;;  %2891 = vst [vmem:[#allocation11_spill] sm:$0xff] %v2224_v54  ;;  %v2234_v56 = vld [vmem:[%s2857_s1 + $0x168] sm:$0xff] }
  0x56   :  { %2892 = vst [vmem:[#allocation12_spill] sm:$0xff] %v2229_v55 }
  0x57   :  { %2893 = vst [vmem:[#allocation13_spill] sm:$0xff] %v2234_v56 }
  0x5a   :  { %748 = vperm.xlu2 %1783, %v2116_v58  }
  0x5b   :  { %743 = vperm.xlu1 %1782, %v2121_v59   ;;  %738 = vperm.xlu0 %1781, %v2126_v60  }
  0x5c   :  { %v2131_v61 = vpop.permute.xlu2 %593 }
  0x62   :  { %763 = vperm.xlu2 %1783, %v2136_v62  }
  0x63   :  { %758 = vperm.xlu1 %1782, %v2141_v63   ;;  %753 = vperm.xlu0 %1781, %v2146_v4  }
  0x64   :  { %366 = vmatmul.bf16.gmra.mxu0 %v1717_v5  ;;  %406 = vmatmul.bf16.gmra.mxu1 %v1725_v9  ;;  %v2163_v15 = vpop.permute.xlu2 %598 }
  0x65   :  { %2885 = vst [vmem:[#allocation5_spill] sm:$0xff] %v2163_v15  ;;  %446 = vmatmul.bf16.gmra.mxu2 %v1733_v10  ;;  %486 = vmatmul.bf16.gmra.mxu3 %v1741_v14  ;;  %v2248_v10 = vld [vmem:[%s2857_s1 + $0x190] sm:$0xff]  ;;  %v2253_v14 = vld [vmem:[%s2857_s1 + $0x188] sm:$0xff] }
  0x66   :  { %2895 = vst [vmem:[#allocation15_spill] sm:$0xff] %v2248_v10  ;;  %v2282_v15 = vld [vmem:[%s2857_s1 + $0x1a8] sm:$0xff] }
  0x67   :  { %2896 = vst [vmem:[#allocation16_spill] sm:$0xff] %v2253_v14 }
  0x68   :  { %2899 = vst [vmem:[#allocation19_spill] sm:$0xff] %v2282_v15 }
  0x6a   :  { %778 = vperm.xlu2 %1783, %v2168_v19  }
  0x6b   :  { %773 = vperm.xlu1 %1782, %v2173_v20   ;;  %768 = vperm.xlu0 %1781, %v2178_v24  }
  0x6c   :  { %v2183_v25 = vpop.permute.xlu2 %613 }
  0x6d   :  { %2887 = vst [vmem:[#allocation7_spill] sm:$0xff] %v2183_v25 }
  0x72   :  { %793 = vperm.xlu2 %1783, %v2188_v26  }
  0x73   :  { %788 = vperm.xlu1 %1782, %v2193_v27   ;;  %783 = vperm.xlu0 %1781, %v2198_v34   ;;  %v2919_v34 = vmov 0  }
  0x74   :  { %371 = vmatmul.bf16.gmra.mxu0 %v1718_v35  ;;  %411 = vmatmul.bf16.gmra.mxu1 %v1726_v36  ;;  %v2215_v45 = vpop.permute.xlu2 %628  ;;  %v2258_v35 = vld [vmem:[%s2857_s1 + $0x180] sm:$0xff]  ;;  %v1719_v36 = vld [vmem:[%s2856_s0 + $0x30] sm:$0xff]  ;;  %v1088_v19 = vsel %vm1024_vm0, 1, %v2919_v34  ;;  %vm1038_vm0 = vcmp.eq.f32.partialorder %v1982_v30, 0.0 }
  0x75   :  { %2890 = vst [vmem:[#allocation10_spill] sm:$0xff] %v2215_v45  ;;  %451 = vmatmul.bf16.gmra.mxu2 %v1734_v37  ;;  %491 = vmatmul.bf16.gmra.mxu3 %v1742_v44  ;;  %v2217_v46 = vpop.permute.xlu1 %583  ;;  %v2219_v47 = vpop.permute.xlu0 %573  ;;  %v1727_v37 = vld [vmem:[%s2856_s0 + $0x70] sm:$0xff]  ;;  %v1102_v29 = vsel %vm1038_vm0, 1, %v2919_v34  ;;  %vm1057_vm0 = vcmp.eq.f32.partialorder %v2121_v59, 0.0  ;;  %v2587_v59 = vld [vmem:[%s2859_s3] ss:$0 sm:$0xff] }
  0x76   :  { %2897 = vst [vmem:[#allocation17_spill] sm:$0xff] %v2258_v35  ;;  %v1735_v44 = vld [vmem:[%s2856_s0 + $0xb0] sm:$0xff]  ;;  %s1812_s3 = smov [#allocation2]  }
  0x77   :  { %s1539_s2 = sshll.u32 %s1812_s3, 4  ;;  %s1540_s2 = int_to_ptr.vmem [resolvable:$true] %s1539_s2 }
  0x7a   :  { %808 = vperm.xlu2 %1783, %v2224_v54   ;;  %v1744_v54 = vld [vmem:[%s2856_s0 + $0xf8] sm:$0xff] }
  0x7b   :  { %803 = vperm.xlu1 %1782, %v2229_v55   ;;  %798 = vperm.xlu0 %1781, %v2234_v56   ;;  %v2342_v55 = vld [vmem:[%s2857_s1 + $0x1d8] sm:$0xff] }
  0x7c   :  { %v2239_v57 = vpop.permute.xlu2 %643  ;;  %2909 = vst [vmem:[#allocation29_spill] sm:$0xff] %v2342_v55 }
  0x7d   :  { %2894 = vst [vmem:[#allocation14_spill] sm:$0xff] %v2239_v57  ;;  %v2241_v5 = vpop.permute.xlu1 %588  ;;  %v2243_v9 = vpop.permute.xlu0 %578 }
  0x82   :  { %823 = vperm.xlu2 %1783, %v2248_v10   ;;  %v2287_v10 = vld [vmem:[%s2857_s1 + $0x1a0] sm:$0xff] }
  0x83   :  { %818 = vperm.xlu1 %1782, %v2253_v14   ;;  %813 = vperm.xlu0 %1781, %v2258_v35   ;;  %2900 = vst [vmem:[#allocation20_spill] sm:$0xff] %v2287_v10  ;;  %v2311_v35 = vld [vmem:[%s2857_s1 + $0x1b8] sm:$0xff] }
  0x84   :  { %376 = vmatmul.bf16.gmra.mxu0 %v1719_v36  ;;  %416 = vmatmul.bf16.gmra.mxu1 %v1727_v37  ;;  %v659_v57 = vpop.permute.xlu2 %658  ;;  %v2292_v36 = vld [vmem:[%s2857_s1 + $0x198] sm:$0xff]  ;;  %2905 = vst [vmem:[#allocation25_spill] sm:$0xff] %v2311_v35 }
  0x85   :  { %456 = vmatmul.bf16.gmra.mxu2 %v1735_v44  ;;  %496 = vmatmul.bf16.gmra.mxu3 %v1743_v3  ;;  %v2275_v45 = vpop.permute.xlu1 %608  ;;  %v2277_v25 = vpop.permute.xlu0 %603  ;;  %2901 = vst [vmem:[#allocation21_spill] sm:$0xff] %v2292_v36 }
  0x86   :  { %2898 = vst [vmem:[#allocation18_spill] sm:$0xff] %v2277_v25  ;;  %v2306_v25 = vld [vmem:[%s2857_s1 + $0x1c0] sm:$0xff] }
  0x87   :  { %2904 = vst [vmem:[#allocation24_spill] sm:$0xff] %v2306_v25 }
  0x8a   :  { %838 = vperm.xlu2 %1783, %v2282_v15   ;;  %v2316_v15 = vld [vmem:[%s2857_s1 + $0x1b0] sm:$0xff] }
  0x8b   :  { %833 = vperm.xlu1 %1782, %v2287_v10   ;;  %828 = vperm.xlu0 %1781, %v2292_v36   ;;  %2906 = vst [vmem:[#allocation26_spill] sm:$0xff] %v2316_v15  ;;  %v1720_v36 = vld [vmem:[%s2856_s0 + $0x38] sm:$0xff] }
  0x8c   :  { %v2297_v3 = vpop.permute.xlu2 %673  ;;  %v1736_v10 = vld [vmem:[%s2856_s0 + $0xb8] sm:$0xff] }
  0x8d   :  { %v2299_v37 = vpop.permute.xlu1 %623  ;;  %v2301_v44 = vpop.permute.xlu0 %618 }
  0x8e   :  { %2902 = vst [vmem:[#allocation22_spill] sm:$0xff] %v2299_v37 }
  0x8f   :  { %2903 = vst [vmem:[#allocation23_spill] sm:$0xff] %v2301_v44  ;;  %v1728_v44 = vld [vmem:[%s2856_s0 + $0x78] sm:$0xff] }
  0x92   :  { %853 = vperm.xlu2 %1783, %v2306_v25   ;;  %v2347_v25 = vld [vmem:[%s2857_s1 + $0x1d0] sm:$0xff] }
  0x93   :  { %848 = vperm.xlu1 %1782, %v2311_v35   ;;  %843 = vperm.xlu0 %1781, %v2316_v15   ;;  %2910 = vst [vmem:[#allocation30_spill] sm:$0xff] %v2347_v25  ;;  %v2369_v15 = vld [vmem:[%s2857_s1 + $0x1e8] sm:$0xff] }
  0x94   :  { %381 = vmatmul.bf16.gmra.mxu0 %v1720_v36  ;;  %421 = vmatmul.bf16.gmra.mxu1 %v1728_v44  ;;  %v2333_v14 = vpop.permute.xlu2 %688  ;;  %v2352_v36 = vld [vmem:[%s2857_s1 + $0x1c8] sm:$0xff]  ;;  %2915 = vst [vmem:[#allocation35_spill] sm:$0xff] %v2369_v15 }
  0x95   :  { %461 = vmatmul.bf16.gmra.mxu2 %v1736_v10  ;;  %501 = vmatmul.bf16.gmra.mxu3 %v1744_v54  ;;  %v2335_v56 = vpop.permute.xlu1 %638  ;;  %v2337_v26 = vpop.permute.xlu0 %633  ;;  %2911 = vst [vmem:[#allocation31_spill] sm:$0xff] %v2352_v36 }
  0x96   :  { %2907 = vst [vmem:[#allocation27_spill] sm:$0xff] %v2335_v56 }
  0x97   :  { %2908 = vst [vmem:[#allocation28_spill] sm:$0xff] %v2337_v26  ;;  %v2364_v26 = vld [vmem:[%s2857_s1 + $0x1f0] sm:$0xff] }
  0x98   :  { %2914 = vst [vmem:[#allocation34_spill] sm:$0xff] %v2364_v26 }
  0x9a   :  { %868 = vperm.xlu2 %1783, %v2342_v55   ;;  %v2374_v55 = vld [vmem:[%s2857_s1 + $0x1e0] sm:$0xff] }
  0x9b   :  { %863 = vperm.xlu1 %1782, %v2347_v25   ;;  %858 = vperm.xlu0 %1781, %v2352_v36   ;;  %2916 = vst [vmem:[#allocation36_spill] sm:$0xff] %v2374_v55 }
  0x9c   :  { %v2357_v54 = vpop.permute.xlu2 %703 }
  0x9d   :  { %2912 = vst [vmem:[#allocation32_spill] sm:$0xff] %v2357_v54  ;;  %v654_v10 = vpop.permute.xlu1 %653  ;;  %v2359_v44 = vpop.permute.xlu0 %648 }
  0x9e   :  { %2913 = vst [vmem:[#allocation33_spill] sm:$0xff] %v2359_v44 }
  0xa1   :  { %v347_v36 = vpop.f32.mrf.mxu0  ;;  %v387_v54 = vpop.f32.mrf.mxu1 }
  0xa2   :  { %v2377_v25 = vmul.f32 %v2219_v47, %v347_v36  ;;  %v2379_v44 = vmul.f32 %v654_v10, %v387_v54  ;;  %883 = vperm.xlu2 %1783, %v2364_v26   ;;  %v2392_v36 = vld [vmem:[%s2857_s1 + $0x1f8] sm:$0xff]  ;;  %v1087_v54 = vsel %vm1023_vm1, 1, %v2919_v34  ;;  %vm1042_vm1 = vcmp.eq.f32.partialorder %v1995_v32, 0.0 }
  0xa3   :  { %878 = vperm.xlu1 %1782, %v2369_v15   ;;  %873 = vperm.xlu0 %1781, %v2374_v55   ;;  %2920 = vst [vmem:[#allocation39_spill] sm:$0xff] %v2392_v36 }
  0xa4   :  { %2917 = vst [vmem:[#allocation37_spill] sm:$0xff] %v2379_v44  ;;  %v2384_v35 = vpop.permute.xlu2 %718 }
  0xa5   :  { %2918 = vst [vmem:[#allocation38_spill] sm:$0xff] %v2384_v35  ;;  %v669_v56 = vpop.permute.xlu1 %668  ;;  %v664_v37 = vpop.permute.xlu0 %663 }
  0xa8   :  { %v427_v47 = vpop.f32.mrf.mxu2 }
  0xa9   :  { %v349_v10 = vpop.f32.mrf.mxu0  ;;  %v389_v26 = vpop.f32.mrf.mxu1 }
  0xaa   :  { %v2396_v35 = vmul.f32 %v2243_v9, %v349_v10  ;;  %v2398_v8 = vmul.f32 %v659_v57, %v389_v26  ;;  %1155 = vperm.xlu2 %1783, %v1088_v19   ;;  %v1091_v9 = vsel %vm1027_vm2, 1, %v2919_v34  ;;  %v1089_v19 = vsel %vm1025_vm3, 1, %v2919_v34  ;;  %v2413_v10 = vpop.f32.mrf.mxu3 }
  0xab   :  { %888 = vperm.xlu0 %1781, %v2392_v36   ;;  %1152 = vperm.xlu1 %1782, %v1087_v54   ;;  %v1090_v57 = vsel %vm1026_vm4, 1, %v2919_v34  ;;  %2922 = vst [vmem:[#allocation41_spill] sm:$0xff] %v2413_v10  ;;  %v1094_v10 = vsel %vm1030_vm5, 1, %v2919_v34  ;;  %vm1040_vm2 = vcmp.eq.f32.partialorder %v1972_v28, 0.0  ;;  %vm1041_vm3 = vcmp.eq.f32.partialorder %v2000_v33, 0.0 }
  0xac   :  { %v734_v2 = vpop.permute.xlu2 %733  ;;  %vm1045_vm4 = vcmp.eq.f32.partialorder %v2025_v39, 0.0  ;;  %vm1043_vm5 = vcmp.eq.f32.partialorder %v1990_v31, 0.0 }
  0xad   :  { %v2403_v55 = vmul.f32 %v734_v2, %v427_v47  ;;  %v2405_v15 = vpop.permute.xlu1 %683  ;;  %v679_v44 = vpop.permute.xlu0 %678 }
  0xaf   :  { %2921 = vst [vmem:[#allocation40_spill] sm:$0xff] %v2403_v55 }
  0xb0   :  { %v2409_v26 = vpop.f32.mrf.mxu2 }
  0xb1   :  { %v352_v54 = vpop.f32.mrf.mxu0  ;;  %v392_v0 = vpop.f32.mrf.mxu1 }
  0xb2   :  { %v2416_v1 = vmul.f32 %v2217_v46, %v352_v54  ;;  %v2418_v47 = vmul.f32 %v664_v37, %v392_v0  ;;  %1164 = vperm.xlu2 %1783, %v1091_v9   ;;  %v1092_v37 = vsel %vm1028_vm6, 1, %v2919_v34  ;;  %v1093_v9 = vsel %vm1029_vm7, 1, %v2919_v34  ;;  %v2435_v6 = vpop.f32.mrf.mxu3 }
  0xb3   :  { %1158 = vperm.xlu0 %1781, %v1089_v19   ;;  %1161 = vperm.xlu1 %1782, %v1090_v57   ;;  %vm1044_vm6 = vcmp.eq.f32.partialorder %v2030_v40, 0.0  ;;  %vm1048_vm7 = vcmp.eq.f32.partialorder %v2043_v42, 0.0 }
  0xb4   :  { %v749_v7 = vpop.permute.xlu2 %748 }
  0xb5   :  { %v2421_v2 = vpop.permute.xlu1 %698  ;;  %v2423_v55 = vpop.permute.xlu0 %693 }
  0xb8   :  { %v432_v46 = vpop.f32.mrf.mxu2 }
  0xb9   :  { %v354_v19 = vpop.f32.mrf.mxu0  ;;  %v394_v57 = vpop.f32.mrf.mxu1 }
  0xba   :  { %v2431_v54 = vmul.f32 %v2241_v5, %v354_v19  ;;  %v2433_v12 = vmul.f32 %v669_v56, %v394_v57  ;;  %1173 = vperm.xlu2 %1783, %v1094_v10   ;;  %v1097_v56 = vsel %vm1033_vm8, 1, %v2919_v34  ;;  %v1095_v10 = vsel %vm1031_vm9, 1, %v2919_v34 }
  0xbb   :  { %1167 = vperm.xlu0 %1781, %v1092_v37   ;;  %1170 = vperm.xlu1 %1782, %v1093_v9   ;;  %v1096_v37 = vsel %vm1032_vm10, 1, %v2919_v34  ;;  %vm1046_vm8 = vcmp.eq.f32.partialorder %v2020_v38, 0.0  ;;  %vm1047_vm9 = vcmp.eq.f32.partialorder %v2048_v43, 0.0  ;;  %vm1051_vm10 = vcmp.eq.f32.partialorder %v2073_v49, 0.0 }
  0xbc   :  { %v2437_v13 = vpop.permute.xlu2 %763  ;;  %v1115_v43 = vsel %vm1051_vm10, 1, %v2919_v34  ;;  %vm1062_vm10 = vcmp.eq.f32.partialorder %v2178_v24, 0.0 }
  0xbd   :  { %v2440_v0 = vpop.permute.xlu1 %713  ;;  %v2442_v36 = vpop.permute.xlu0 %708 }
  0xbe   :  { %2923 = vst [vmem:[#allocation42_spill] sm:$0xff] %v2442_v36 }
  0xc0   :  { %v434_v5 = vpop.f32.mrf.mxu2 }
  0xc1   :  { %v2449_v9 = vmul.f32 %v749_v7, %v434_v5  ;;  %v397_v19 = vpop.f32.mrf.mxu1  ;;  %v2451_v57 = vpop.f32.mrf.mxu0  ;;  %v1100_v5 = vsel %vm1036_vm11, 1, %v2919_v34  ;;  %vm1049_vm11 = vcmp.eq.f32.partialorder %v2038_v41, 0.0 }
  0xc2   :  { %v2454_v17 = vmul.f32 %v2297_v3, %v397_v19  ;;  %1182 = vperm.xlu2 %1783, %v1097_v56   ;;  %v472_v7 = vpop.f32.mrf.mxu3  ;;  %v1098_v56 = vsel %vm1034_vm12, 1, %v2919_v34  ;;  %vm1050_vm12 = vcmp.eq.f32.partialorder %v2078_v50, 0.0 }
  0xc3   :  { %2924 = vst [vmem:[#allocation43_spill] sm:$0xff] %v2449_v9  ;;  %1176 = vperm.xlu0 %1781, %v1095_v10   ;;  %1179 = vperm.xlu1 %1782, %v1096_v37   ;;  %v1099_v10 = vsel %vm1035_vm13, 1, %v2919_v34  ;;  %vm1054_vm13 = vcmp.eq.f32.partialorder %v2091_v52, 0.0 }
  0xc4   :  { %v2456_v11 = vpop.permute.xlu2 %778  ;;  %v1118_v50 = vsel %vm1054_vm13, 1, %v2919_v34 }
  0xc5   :  { %2925 = vst [vmem:[#allocation44_spill] sm:$0xff] %v2456_v11  ;;  %v2459_v18 = vpop.permute.xlu1 %728  ;;  %v2461_v36 = vpop.permute.xlu0 %723 }
  0xc8   :  { %v437_v3 = vpop.f32.mrf.mxu2 }
  0xc9   :  { %v399_v37 = vpop.f32.mrf.mxu1  ;;  %v2470_v22 = vpop.f32.mrf.mxu0 }
  0xca   :  { %v2468_v19 = vmul.f32 %v679_v44, %v399_v37  ;;  %1191 = vperm.xlu2 %1783, %v1100_v5   ;;  %v1103_v5 = vsel %vm1039_vm14, 1, %v2919_v34  ;;  %v1101_v37 = vsel %vm1037_vm15, 1, %v2919_v34  ;;  %vm1052_vm14 = vcmp.eq.f32.partialorder %v2068_v48, 0.0 }
  0xcb   :  { %1185 = vperm.xlu0 %1781, %v1098_v56   ;;  %1188 = vperm.xlu1 %1782, %v1099_v10   ;;  %v2483_v56 = vpop.f32.mrf.mxu3  ;;  %vm1053_vm15 = vcmp.eq.f32.partialorder %v2096_v53, 0.0 }
  0xcc   :  { %v2472_v11 = vpop.permute.xlu2 %793 }
  0xcd   :  { %2926 = vst [vmem:[#allocation45_spill] sm:$0xff] %v2472_v11  ;;  %v744_v16 = vpop.permute.xlu1 %743  ;;  %v739_v23 = vpop.permute.xlu0 %738 }
  0xce   :  { %v2477_v9 = vmul.f32 %v744_v16, %v432_v46  ;;  %v2480_v44 = vmul.f32 %v739_v23, %v2409_v26  ;;  %v1106_v23 = vsel %vm1042_vm1, 1, %v2919_v34  ;;  %vm1055_vm1 = vcmp.eq.f32.partialorder %v2086_v51, 0.0 }
  0xcf   :  { %v960_v51 = vadd.f32 %v2587_v59, %v2396_v35  ;;  %v895_v35 = vmul.f32 %v2131_v61, %v2451_v57 }
  0xd0   :  { %2927 = vst [vmem:[#allocation46_spill] sm:$0xff] %v2480_v44  ;;  %v2485_v10 = vpop.f32.mrf.mxu2 }
  0xd1   :  { %v2489_v11 = vpop.f32.mrf.mxu1  ;;  %v2498_v46 = vpop.f32.mrf.mxu0 }
  0xd2   :  { %1200 = vperm.xlu2 %1783, %v1103_v5  }
  0xd3   :  { %1194 = vperm.xlu0 %1781, %v1101_v37   ;;  %1197 = vperm.xlu1 %1782, %v1102_v29   ;;  %v1104_v37 = vsel %vm1040_vm2, 1, %v2919_v34  ;;  %v1105_v29 = vsel %vm1041_vm3, 1, %v2919_v34  ;;  %v2508_v44 = vpop.f32.mrf.mxu3  ;;  %vm1056_vm2 = vcmp.eq.f32.partialorder %v2126_v60, 0.0  ;;  %vm1060_vm3 = vcmp.eq.f32.partialorder %v2141_v63, 0.0 }
  0xd4   :  { %v2491_v21 = vpop.permute.xlu2 %808 }
  0xd5   :  { %2928 = vst [vmem:[#allocation47_spill] sm:$0xff] %v2491_v21  ;;  %v2494_v30 = vpop.permute.xlu1 %758  ;;  %v754_v26 = vpop.permute.xlu0 %753 }
  0xd6   :  { %v2500_v16 = vmul.f32 %v754_v26, %v437_v3 }
  0xd8   :  { %2929 = vst [vmem:[#allocation48_spill] sm:$0xff] %v2500_v16  ;;  %v442_v5 = vpop.f32.mrf.mxu2 }
  0xd9   :  { %v2506_v32 = vmul.f32 %v2437_v13, %v442_v5  ;;  %v404_v21 = vpop.f32.mrf.mxu1  ;;  %v1109_v13 = vsel %vm1045_vm4, 1, %v2919_v34  ;;  %v2521_v5 = vpop.f32.mrf.mxu0 }
  0xda   :  { %v2511_v28 = vmul.f32 %v2333_v14, %v404_v21  ;;  %1209 = vperm.xlu2 %1783, %v1106_v23   ;;  %v1107_v21 = vsel %vm1043_vm5, 1, %v2919_v34  ;;  %v1108_v23 = vsel %vm1044_vm6, 1, %v2919_v34  ;;  %vm1058_vm5 = vcmp.eq.f32.partialorder %v2116_v58, 0.0 }
  0xdb   :  { %1203 = vperm.xlu0 %1781, %v1104_v37   ;;  %1206 = vperm.xlu1 %1782, %v1105_v29   ;;  %v479_v31 = vpop.f32.mrf.mxu3  ;;  %vm1059_vm6 = vcmp.eq.f32.partialorder %v2146_v4, 0.0  ;;  %v1122_v63 = vsel %vm1058_vm5, 1, %v2919_v34  ;;  %v963_v58 = vadd.f32 %v2587_v59, %v895_v35 }
  0xdc   :  { %v824_v33 = vpop.permute.xlu2 %823 }
  0xdd   :  { %v2514_v3 = vmul.f32 %v824_v33, %v472_v7  ;;  %v2516_v26 = vpop.permute.xlu1 %773  ;;  %v769_v16 = vpop.permute.xlu0 %768 }
  0xdf   :  { %2930 = vst [vmem:[#allocation49_spill] sm:$0xff] %v2514_v3 }
  0xe0   :  { %v444_v14 = vpop.f32.mrf.mxu2 }
  0xe1   :  { %v2525_v37 = vmul.f32 %v769_v16, %v444_v14  ;;  %v407_v39 = vpop.f32.mrf.mxu1  ;;  %v1110_v16 = vsel %vm1046_vm8, 1, %v2919_v34  ;;  %v2542_v14 = vpop.f32.mrf.mxu0 }
  0xe2   :  { %v2528_v7 = vmul.f32 %v2423_v55, %v407_v39  ;;  %1218 = vperm.xlu2 %1783, %v1109_v13   ;;  %v1112_v55 = vsel %vm1048_vm7, 1, %v2919_v34  ;;  %v1111_v13 = vsel %vm1047_vm9, 1, %v2919_v34  ;;  %v1114_v39 = vsel %vm1050_vm12, 1, %v2919_v34 }
  0xe3   :  { %1212 = vperm.xlu0 %1781, %v1107_v21   ;;  %1215 = vperm.xlu1 %1782, %v1108_v23   ;;  %v1113_v23 = vsel %vm1049_vm11, 1, %v2919_v34  ;;  %v482_v60 = vpop.f32.mrf.mxu3  ;;  %vm1063_vm7 = vcmp.eq.f32.partialorder %v2173_v20, 0.0  ;;  %vm1061_vm9 = vcmp.eq.f32.partialorder %v2136_v62, 0.0  ;;  %vm1066_vm11 = vcmp.eq.f32.partialorder %v2193_v27, 0.0 }
  0xe4   :  { %v839_v40 = vpop.permute.xlu2 %838  ;;  %v1127_v57 = vsel %vm1063_vm7, 1, %v2919_v34  ;;  %v1125_v20 = vsel %vm1061_vm9, 1, %v2919_v34 }
  0xe5   :  { %v2531_v29 = vmul.f32 %v839_v40, %v479_v31  ;;  %v2533_v33 = vpop.permute.xlu1 %788  ;;  %v2535_v3 = vpop.permute.xlu0 %783 }
  0xe9   :  { %v2556_v31 = vpop.f32.mrf.mxu0 }
  0xea   :  { %1227 = vperm.xlu2 %1783, %v1112_v55  }
  0xeb   :  { %1221 = vperm.xlu0 %1781, %v1110_v16   ;;  %1224 = vperm.xlu1 %1782, %v1111_v13   ;;  %v1116_v16 = vsel %vm1052_vm14, 1, %v2919_v34  ;;  %v1117_v13 = vsel %vm1053_vm15, 1, %v2919_v34 }
  0xec   :  { %v2544_v42 = vpop.permute.xlu2 %853 }
  0xed   :  { %v2547_v21 = vpop.permute.xlu1 %803  ;;  %v2549_v38 = vpop.permute.xlu0 %798 }
  0xf1   :  { %v372_v53 = vpop.f32.mrf.mxu0 }
  0xf2   :  { %1236 = vperm.xlu2 %1783, %v1115_v43  }
  0xf3   :  { %1230 = vperm.xlu0 %1781, %v1113_v23   ;;  %1233 = vperm.xlu1 %1782, %v1114_v39   ;;  %v1121_v23 = vsel %vm1057_vm0, 1, %v2919_v34  ;;  %v1119_v39 = vsel %vm1055_vm1, 1, %v2919_v34 }
  0xf4   :  { %v2558_v49 = vpop.permute.xlu2 %868 }
  0xf5   :  { %v819_v40 = vpop.permute.xlu1 %818  ;;  %v2561_v55 = vpop.permute.xlu0 %813 }
  0xf6   :  { %v2566_v41 = vmul.f32 %v819_v40, %v2435_v6  ;;  %v1120_v40 = vsel %vm1056_vm2, 1, %v2919_v34 }
  0xfa   :  { %1245 = vperm.xlu2 %1783, %v1118_v50  }
  0xfb   :  { %1239 = vperm.xlu0 %1781, %v1116_v16   ;;  %1242 = vperm.xlu1 %1782, %v1117_v13  }
  0xfc   :  { %v2571_v52 = vpop.permute.xlu2 %883 }
  0xfd   :  { %2931 = vst [vmem:[#allocation50_spill] sm:$0xff] %v2571_v52  ;;  %v2574_v43 = vpop.permute.xlu1 %833  ;;  %v829_v48 = vpop.permute.xlu0 %828 }
  0xfe   :  { %v2579_v6 = vmul.f32 %v829_v48, %v2483_v56 }
 0x102   :  { %1254 = vperm.xlu2 %1783, %v1121_v23   ;;  %v1124_v23 = vsel %vm1060_vm3, 1, %v2919_v34 }
 0x103   :  { %1248 = vperm.xlu0 %1781, %v1119_v39   ;;  %1251 = vperm.xlu1 %1782, %v1120_v40   ;;  %v2601_v39 = vpop.f32.mrf.mxu0  ;;  %v1123_v40 = vsel %vm1059_vm6, 1, %v2919_v34 }
 0x104   :  { %v1156_v56 = vpop.permute.xlu2 %1155 }
 0x105   :  { %v2592_v50 = vpop.permute.xlu1 %848  ;;  %vm1344_vm4 = vcmp.eq.s32.totalorder %v1156_v56, 1  ;;  %v844_v16 = vpop.permute.xlu0 %843  ;;  %v898_v56 = vmul.f32 %v2275_v45, %v2521_v5  ;;  %v2932_v5 = vld [vmem:[#allocation6_spill] sm:$0xff] }
 0x106   :  { %v1408_v13 = vsel %vm1344_vm4, 0.0, %v960_v51  ;;  %v2596_v48 = vmul.f32 %v844_v16, %v482_v60  ;;  %v2616_v16 = vpop.f32.mrf.mxu1  ;;  %vm1064_vm13 = vcmp.eq.f32.partialorder %v2932_v5, 0.0  ;;  %v2935_v5 = vld [vmem:[#allocation12_spill] sm:$0xff] }
 0x107   :  { %1472 = vst [vmem:[#allocation2 + $0x8] sm:$0xff] %v1408_v13  ;;  %v1126_v13 = vsel %vm1062_vm10, 1, %v2919_v34  ;;  %v966_v62 = vadd.f32 %v2587_v59, %v898_v56  ;;  %vm1069_vm15 = vcmp.eq.f32.partialorder %v2935_v5, 0.0 }
 0x10a   :  { %1263 = vperm.xlu2 %1783, %v1124_v23  }
 0x10b   :  { %1257 = vperm.xlu0 %1781, %v1122_v63   ;;  %1260 = vperm.xlu1 %1782, %v1123_v40   ;;  %v2620_v23 = vpop.f32.mrf.mxu0  ;;  %v2933_v63 = vld [vmem:[#allocation9_spill] sm:$0xff] }
 0x10c   :  { %v1165_v4 = vpop.permute.xlu2 %1164  ;;  %vm1065_vm14 = vcmp.eq.f32.partialorder %v2933_v63, 0.0 }
 0x10d   :  { %v2607_v51 = vpop.permute.xlu1 %863  ;;  %vm1347_vm8 = vcmp.eq.s32.totalorder %v1165_v4, 1  ;;  %v2609_v60 = vpop.permute.xlu0 %858  ;;  %v2934_v4 = vld [vmem:[#allocation22_spill] sm:$0xff]  ;;  %v1129_v56 = vsel %vm1065_vm14, 1, %v2919_v34 }
 0x10e   :  { %v1411_v61 = vsel %vm1347_vm8, 0.0, %v963_v58  ;;  %v1130_v58 = vsel %vm1066_vm11, 1, %v2919_v34  ;;  %v2634_v27 = vpop.f32.mrf.mxu1 }
 0x10f   :  { %1475 = vst [vmem:[#allocation2 + $0x20] sm:$0xff] %v1411_v61  ;;  %v901_v61 = vmul.f32 %v2934_v4, %v372_v53  ;;  %v2938_v4 = vld [vmem:[#allocation13_spill] sm:$0xff] }
 0x110   :  { %vm1068_vm2 = vcmp.eq.f32.partialorder %v2938_v4, 0.0 }
 0x112   :  { %1272 = vperm.xlu2 %1783, %v1127_v57   ;;  %v1128_v57 = vsel %vm1064_vm13, 1, %v2919_v34 }
 0x113   :  { %1266 = vperm.xlu0 %1781, %v1125_v20   ;;  %1269 = vperm.xlu1 %1782, %v1126_v13   ;;  %v969_v20 = vadd.f32 %v2587_v59, %v901_v61  ;;  %v379_v13 = vpop.f32.mrf.mxu0  ;;  %v1133_v61 = vsel %vm1069_vm15, 1, %v2919_v34 }
 0x114   :  { %v1174_v24 = vpop.permute.xlu2 %1173 }
 0x115   :  { %v2624_v35 = vpop.permute.xlu1 %878  ;;  %vm1350_vm12 = vcmp.eq.s32.totalorder %v1174_v24, 1  ;;  %v2626_v45 = vpop.permute.xlu0 %873 }
 0x116   :  { %v1414_v40 = vsel %vm1350_vm12, 0.0, %v966_v62  ;;  %v959_v62 = vadd.f32 %v2587_v59, %v2377_v25  ;;  %v1132_v25 = vsel %vm1068_vm2, 1, %v2919_v34 }
 0x117   :  { %1478 = vst [vmem:[#allocation2 + $0x38] sm:$0xff] %v1414_v40  ;;  %v2937_v40 = vld [vmem:[#allocation8_spill] sm:$0xff] }
 0x118   :  { %vm1067_vm1 = vcmp.eq.f32.partialorder %v2937_v40, 0.0  ;;  %v2650_v40 = vpop.f32.mrf.mxu1 }
 0x119   :  { %v1131_v5 = vsel %vm1067_vm1, 1, %v2919_v34 }
 0x11a   :  { %1281 = vperm.xlu2 %1783, %v1130_v58  }
 0x11b   :  { %1275 = vperm.xlu0 %1781, %v1128_v57   ;;  %1278 = vperm.xlu1 %1782, %v1129_v56   ;;  %v2939_v56 = vld [vmem:[#allocation27_spill] sm:$0xff] }
 0x11c   :  { %v1183_v24 = vpop.permute.xlu2 %1182  ;;  %v904_v52 = vmul.f32 %v2939_v56, %v379_v13  ;;  %v962_v13 = vadd.f32 %v2587_v59, %v2431_v54 }
 0x11d   :  { %vm1353_vm0 = vcmp.eq.s32.totalorder %v1183_v24, 1  ;;  %v2640_v53 = vpop.permute.xlu0 %888  ;;  %v1153_v63 = vpop.permute.xlu1 %1152  ;;  %v961_v24 = vadd.f32 %v2587_v59, %v2416_v1 }
 0x11e   :  { %2936 = vst [vmem:[#allocation6_spill] sm:$0xff] %v2640_v53  ;;  %v1417_v58 = vsel %vm1353_vm0, 0.0, %v969_v20  ;;  %vm1343_vm3 = vcmp.eq.s32.totalorder %v1153_v63, 1  ;;  %v972_v20 = vadd.f32 %v2587_v59, %v904_v52  ;;  %v2940_v63 = vld [vmem:[#allocation16_spill] sm:$0xff] }
 0x11f   :  { %1481 = vst [vmem:[#allocation2 + $0x50] sm:$0xff] %v1417_v58  ;;  %v1407_v57 = vsel %vm1343_vm3, 0.0, %v959_v62  ;;  %vm1072_vm4 = vcmp.eq.f32.partialorder %v2940_v63, 0.0 }
 0x120   :  { %1471 = vst [vmem:[#allocation2] sm:$0xff] %v1407_v57  ;;  %v2941_v57 = vld [vmem:[#allocation11_spill] sm:$0xff]  ;;  %v1136_v52 = vsel %vm1072_vm4, 1, %v2919_v34 }
 0x121   :  { %vm1070_vm6 = vcmp.eq.f32.partialorder %v2941_v57, 0.0  ;;  %v2944_v57 = vld [vmem:[#allocation18_spill] sm:$0xff] }
 0x122   :  { %1290 = vperm.xlu2 %1783, %v1133_v61   ;;  %v2942_v61 = vld [vmem:[#allocation17_spill] sm:$0xff]  ;;  %v1134_v54 = vsel %vm1070_vm6, 1, %v2919_v34  ;;  %v897_v53 = vmul.f32 %v2944_v57, %v2498_v46 }
 0x123   :  { %1284 = vperm.xlu0 %1781, %v1131_v5   ;;  %1287 = vperm.xlu1 %1782, %v1132_v25   ;;  %vm1071_vm7 = vcmp.eq.f32.partialorder %v2942_v61, 0.0  ;;  %v2943_v25 = vld [vmem:[#allocation5_spill] sm:$0xff] }
 0x124   :  { %v1192_v62 = vpop.permute.xlu2 %1191  ;;  %v896_v63 = vmul.f32 %v2943_v25, %v2470_v22  ;;  %v965_v22 = vadd.f32 %v2587_v59, %v897_v53  ;;  %v2948_v46 = vld [vmem:[#allocation21_spill] sm:$0xff] }
 0x125   :  { %vm1356_vm5 = vcmp.eq.s32.totalorder %v1192_v62, 1  ;;  %v1159_v4 = vpop.permute.xlu0 %1158  ;;  %v1162_v58 = vpop.permute.xlu1 %1161  ;;  %v1135_v62 = vsel %vm1071_vm7, 1, %v2919_v34  ;;  %vm1074_vm13 = vcmp.eq.f32.partialorder %v2948_v46, 0.0 }
 0x126   :  { %v1420_v56 = vsel %vm1356_vm5, 0.0, %v972_v20  ;;  %vm1345_vm8 = vcmp.eq.s32.totalorder %v1159_v4, 1  ;;  %vm1346_vm9 = vcmp.eq.s32.totalorder %v1162_v58, 1  ;;  %v2945_v20 = vld [vmem:[#allocation37_spill] sm:$0xff]  ;;  %v2946_v58 = vld [vmem:[#allocation20_spill] sm:$0xff] }
 0x127   :  { %1484 = vst [vmem:[#allocation2 + $0x68] sm:$0xff] %v1420_v56  ;;  %v1409_v1 = vsel %vm1345_vm8, 0.0, %v961_v24  ;;  %v1410_v5 = vsel %vm1346_vm9, 0.0, %v962_v13  ;;  %v975_v24 = vadd.f32 %v2587_v59, %v2945_v20  ;;  %v964_v13 = vadd.f32 %v2587_v59, %v896_v63 }
 0x128   :  { %1473 = vst [vmem:[#allocation2 + $0x10] sm:$0xff] %v1409_v1  ;;  %vm1075_vm10 = vcmp.eq.f32.partialorder %v2946_v58, 0.0  ;;  %v2947_v1 = vld [vmem:[#allocation15_spill] sm:$0xff]  ;;  %v1138_v20 = vsel %vm1074_vm13, 1, %v2919_v34 }
 0x129   :  { %1474 = vst [vmem:[#allocation2 + $0x18] sm:$0xff] %v1410_v5  ;;  %vm1073_vm12 = vcmp.eq.f32.partialorder %v2947_v1, 0.0  ;;  %v2672_v5 = vpop.f32.mrf.mxu1 }
 0x12a   :  { %1299 = vperm.xlu2 %1783, %v1136_v52   ;;  %v1137_v57 = vsel %vm1073_vm12, 1, %v2919_v34 }
 0x12b   :  { %1293 = vperm.xlu0 %1781, %v1134_v54   ;;  %1296 = vperm.xlu1 %1782, %v1135_v62   ;;  %v1139_v54 = vsel %vm1075_vm10, 1, %v2919_v34  ;;  %v2949_v62 = vld [vmem:[#allocation7_spill] sm:$0xff] }
 0x12c   :  { %v1201_v4 = vpop.permute.xlu2 %1200  ;;  %v899_v53 = vmul.f32 %v2949_v62, %v2542_v14  ;;  %v2951_v14 = vld [vmem:[#allocation25_spill] sm:$0xff] }
 0x12d   :  { %vm1359_vm11 = vcmp.eq.s32.totalorder %v1201_v4, 1  ;;  %v1168_v61 = vpop.permute.xlu0 %1167  ;;  %v1171_v56 = vpop.permute.xlu1 %1170  ;;  %v2950_v4 = vld [vmem:[#allocation23_spill] sm:$0xff]  ;;  %vm1078_vm0 = vcmp.eq.f32.partialorder %v2951_v14, 0.0 }
 0x12e   :  { %v1423_v52 = vsel %vm1359_vm11, 0.0, %v975_v24  ;;  %vm1348_vm14 = vcmp.eq.s32.totalorder %v1168_v61, 1  ;;  %vm1349_vm15 = vcmp.eq.s32.totalorder %v1171_v56, 1  ;;  %v900_v58 = vmul.f32 %v2950_v4, %v2556_v31  ;;  %v2953_v31 = vld [vmem:[#allocation26_spill] sm:$0xff] }
 0x12f   :  { %1487 = vst [vmem:[#allocation2 + $0x80] sm:$0xff] %v1423_v52  ;;  %v1412_v25 = vsel %vm1348_vm14, 0.0, %v964_v13  ;;  %v1413_v63 = vsel %vm1349_vm15, 0.0, %v965_v22  ;;  %v978_v24 = vadd.f32 %v2587_v59, %v2433_v12  ;;  %v967_v13 = vadd.f32 %v2587_v59, %v899_v53  ;;  %v382_v22 = vpop.f32.mrf.mxu0  ;;  %v2952_v52 = vld [vmem:[#allocation19_spill] sm:$0xff] }
 0x130   :  { %1476 = vst [vmem:[#allocation2 + $0x28] sm:$0xff] %v1412_v25  ;;  %v968_v56 = vadd.f32 %v2587_v59, %v900_v58  ;;  %vm1076_vm2 = vcmp.eq.f32.partialorder %v2952_v52, 0.0  ;;  %vm1077_vm3 = vcmp.eq.f32.partialorder %v2953_v31, 0.0  ;;  %v1142_v62 = vsel %vm1078_vm0, 1, %v2919_v34  ;;  %v2957_v52 = vld [vmem:[#allocation24_spill] sm:$0xff]  ;;  %v2958_v31 = vld [vmem:[#allocation31_spill] sm:$0xff] }
 0x131   :  { %1477 = vst [vmem:[#allocation2 + $0x30] sm:$0xff] %v1413_v63  ;;  %v2688_v63 = vpop.f32.mrf.mxu2  ;;  %v913_v53 = vmul.f32 %v2405_v15, %v2489_v11  ;;  %v2695_v4 = vpop.f32.mrf.mxu1  ;;  %v1140_v58 = vsel %vm1076_vm2, 1, %v2919_v34  ;;  %vm1079_vm8 = vcmp.eq.f32.partialorder %v2957_v52, 0.0  ;;  %vm1080_vm9 = vcmp.eq.f32.partialorder %v2958_v31, 0.0  ;;  %v2963_v52 = vld [vmem:[#allocation36_spill] sm:$0xff] }
 0x132   :  { %1308 = vperm.xlu2 %1783, %v1139_v54   ;;  %vm1083_vm15 = vcmp.eq.f32.partialorder %v2963_v52, 0.0  ;;  %v979_v52 = vadd.f32 %v2587_v59, %v2454_v17  ;;  %v982_v17 = vadd.f32 %v2587_v59, %v2511_v28  ;;  %v2966_v28 = vld [vmem:[#allocation32_spill] sm:$0xff] }
 0x133   :  { %1302 = vperm.xlu0 %1781, %v1137_v57   ;;  %1305 = vperm.xlu1 %1782, %v1138_v20   ;;  %v2954_v57 = vld [vmem:[#allocation10_spill] sm:$0xff] }
 0x134   :  { %v1210_v61 = vpop.permute.xlu2 %1209  ;;  %v902_v20 = vmul.f32 %v2954_v57, %v2601_v39  ;;  %v2956_v39 = vld [vmem:[#allocation30_spill] sm:$0xff] }
 0x135   :  { %vm1362_vm1 = vcmp.eq.s32.totalorder %v1210_v61, 1  ;;  %v1177_v1 = vpop.permute.xlu0 %1176  ;;  %v1180_v46 = vpop.permute.xlu1 %1179  ;;  %v2955_v61 = vld [vmem:[#allocation28_spill] sm:$0xff]  ;;  %vm1081_vm6 = vcmp.eq.f32.partialorder %v2956_v39, 0.0  ;;  %v2959_v57 = vld [vmem:[#allocation14_spill] sm:$0xff] }
 0x136   :  { %v1426_v25 = vsel %vm1362_vm1, 0.0, %v978_v24  ;;  %vm1351_vm4 = vcmp.eq.s32.totalorder %v1177_v1, 1  ;;  %vm1352_vm5 = vcmp.eq.s32.totalorder %v1180_v46, 1  ;;  %v1141_v24 = vsel %vm1077_vm3, 1, %v2919_v34 }
 0x137   :  { %1490 = vst [vmem:[#allocation2 + $0x98] sm:$0xff] %v1426_v25  ;;  %v1415_v12 = vsel %vm1351_vm4, 0.0, %v967_v13  ;;  %v1416_v54 = vsel %vm1352_vm5, 0.0, %v968_v56  ;;  %v903_v14 = vmul.f32 %v2955_v61, %v2620_v23  ;;  %v981_v13 = vadd.f32 %v2587_v59, %v913_v53  ;;  %v384_v23 = vpop.f32.mrf.mxu0 }
 0x138   :  { %1479 = vst [vmem:[#allocation2 + $0x40] sm:$0xff] %v1415_v12  ;;  %v970_v15 = vadd.f32 %v2587_v59, %v902_v20  ;;  %v916_v53 = vmul.f32 %v2421_v2, %v2616_v16  ;;  %v905_v20 = vmul.f32 %v2959_v57, %v382_v22  ;;  %v2961_v22 = vld [vmem:[#allocation35_spill] sm:$0xff] }
 0x139   :  { %1480 = vst [vmem:[#allocation2 + $0x48] sm:$0xff] %v1416_v54  ;;  %v971_v56 = vadd.f32 %v2587_v59, %v903_v14  ;;  %v2713_v61 = vpop.f32.mrf.mxu2  ;;  %v2960_v14 = vld [vmem:[#allocation33_spill] sm:$0xff]  ;;  %vm1084_vm12 = vcmp.eq.f32.partialorder %v2961_v22, 0.0 }
 0x13a   :  { %1317 = vperm.xlu2 %1783, %v1142_v62   ;;  %v1145_v62 = vsel %vm1081_vm6, 1, %v2919_v34  ;;  %v973_v2 = vadd.f32 %v2587_v59, %v905_v20  ;;  %v976_v20 = vadd.f32 %v2587_v59, %v2398_v8 }
 0x13b   :  { %1311 = vperm.xlu0 %1781, %v1140_v58   ;;  %1314 = vperm.xlu1 %1782, %v1141_v24   ;;  %v1143_v58 = vsel %vm1079_vm8, 1, %v2919_v34  ;;  %v1144_v24 = vsel %vm1080_vm9, 1, %v2919_v34 }
 0x13c   :  { %v1219_v11 = vpop.permute.xlu2 %1218 }
 0x13d   :  { %vm1365_vm7 = vcmp.eq.s32.totalorder %v1219_v11, 1  ;;  %v1186_v1 = vpop.permute.xlu0 %1185  ;;  %v1189_v46 = vpop.permute.xlu1 %1188 }
 0x13e   :  { %v1429_v25 = vsel %vm1365_vm7, 0.0, %v981_v13  ;;  %vm1354_vm10 = vcmp.eq.s32.totalorder %v1186_v1, 1  ;;  %vm1355_vm11 = vcmp.eq.s32.totalorder %v1189_v46, 1  ;;  %v906_v13 = vmul.f32 %v2960_v14, %v384_v23  ;;  %v2716_v11 = vpop.f32.mrf.mxu1  ;;  %v2962_v46 = vld [vmem:[#allocation29_spill] sm:$0xff] }
 0x13f   :  { %1493 = vst [vmem:[#allocation2 + $0xb0] sm:$0xff] %v1429_v25  ;;  %v1418_v12 = vsel %vm1354_vm10, 0.0, %v970_v15  ;;  %v1419_v54 = vsel %vm1355_vm11, 0.0, %v971_v56  ;;  %v984_v15 = vadd.f32 %v2587_v59, %v916_v53  ;;  %vm1082_vm14 = vcmp.eq.f32.partialorder %v2962_v46, 0.0 }
 0x140   :  { %1482 = vst [vmem:[#allocation2 + $0x58] sm:$0xff] %v1418_v12  ;;  %v974_v39 = vadd.f32 %v2587_v59, %v906_v13  ;;  %v1148_v12 = vsel %vm1084_vm12, 1, %v2919_v34  ;;  %v1147_v53 = vsel %vm1083_vm15, 1, %v2919_v34 }
 0x141   :  { %1483 = vst [vmem:[#allocation2 + $0x60] sm:$0xff] %v1419_v54  ;;  %v919_v54 = vmul.f32 %v2440_v0, %v2672_v5  ;;  %v2729_v57 = vpop.f32.mrf.mxu2  ;;  %v977_v0 = vadd.f32 %v2587_v59, %v2418_v47 }
 0x142   :  { %1326 = vperm.xlu2 %1783, %v1145_v62   ;;  %v1146_v62 = vsel %vm1082_vm14, 1, %v2919_v34 }
 0x143   :  { %1320 = vperm.xlu0 %1781, %v1143_v58   ;;  %1323 = vperm.xlu1 %1782, %v1144_v24   ;;  %v987_v58 = vadd.f32 %v2587_v59, %v919_v54 }
 0x144   :  { %v1228_v16 = vpop.permute.xlu2 %1227 }
 0x145   :  { %vm1368_vm13 = vcmp.eq.s32.totalorder %v1228_v16, 1  ;;  %v1195_v56 = vpop.permute.xlu0 %1194  ;;  %v1198_v1 = vpop.permute.xlu1 %1197 }
 0x146   :  { %v1432_v31 = vsel %vm1368_vm13, 0.0, %v984_v15  ;;  %vm1357_vm0 = vcmp.eq.s32.totalorder %v1195_v56, 1  ;;  %vm1358_vm1 = vcmp.eq.s32.totalorder %v1198_v1, 1  ;;  %v424_v24 = vpop.f32.mrf.mxu1  ;;  %v2964_v15 = vld [vmem:[#allocation34_spill] sm:$0xff] }
 0x147   :  { %1496 = vst [vmem:[#allocation2 + $0xc8] sm:$0xff] %v1432_v31  ;;  %v1421_v23 = vsel %vm1357_vm0, 0.0, %v973_v2  ;;  %v1422_v25 = vsel %vm1358_vm1, 0.0, %v974_v39  ;;  %vm1085_vm3 = vcmp.eq.f32.partialorder %v2964_v15, 0.0  ;;  %v2965_v2 = vld [vmem:[#allocation39_spill] sm:$0xff]  ;;  %v922_v39 = vmul.f32 %v2459_v18, %v424_v24 }
 0x148   :  { %1485 = vst [vmem:[#allocation2 + $0x70] sm:$0xff] %v1421_v23  ;;  %vm1086_vm4 = vcmp.eq.f32.partialorder %v2965_v2, 0.0  ;;  %v1149_v56 = vsel %vm1085_vm3, 1, %v2919_v34  ;;  %v980_v31 = vadd.f32 %v2587_v59, %v2468_v19  ;;  %v983_v19 = vadd.f32 %v2587_v59, %v2528_v7  ;;  %v2967_v7 = vld [vmem:[#allocation42_spill] sm:$0xff]  ;;  %v2760_v2 = vpop.f32.mrf.mxu3 }
 0x149   :  { %1486 = vst [vmem:[#allocation2 + $0x78] sm:$0xff] %v1422_v25  ;;  %v1150_v47 = vsel %vm1086_vm4, 1, %v2919_v34  ;;  %v990_v1 = vadd.f32 %v2587_v59, %v922_v39  ;;  %v454_v25 = vpop.f32.mrf.mxu2  ;;  %v918_v15 = vmul.f32 %v2967_v7, %v2650_v40  ;;  %v931_v40 = vmul.f32 %v2516_v26, %v2688_v63 }
 0x14a   :  { %1335 = vperm.xlu2 %1783, %v1148_v12  }
 0x14b   :  { %1329 = vperm.xlu0 %1781, %v1146_v62   ;;  %1332 = vperm.xlu1 %1782, %v1147_v53   ;;  %v993_v62 = vadd.f32 %v2587_v59, %v2477_v9  ;;  %v986_v39 = vadd.f32 %v2587_v59, %v918_v15 }
 0x14c   :  { %v1237_v14 = vpop.permute.xlu2 %1236 }
 0x14d   :  { %vm1371_vm2 = vcmp.eq.s32.totalorder %v1237_v14, 1  ;;  %v1204_v5 = vpop.permute.xlu0 %1203  ;;  %v1207_v13 = vpop.permute.xlu1 %1206 }
 0x14e   :  { %v1435_v16 = vsel %vm1371_vm2, 0.0, %v987_v58  ;;  %vm1360_vm5 = vcmp.eq.s32.totalorder %v1204_v5, 1  ;;  %vm1361_vm6 = vcmp.eq.s32.totalorder %v1207_v13, 1  ;;  %v928_v5 = vmul.f32 %v2494_v30, %v2485_v10 }
 0x14f   :  { %1499 = vst [vmem:[#allocation2 + $0xe0] sm:$0xff] %v1435_v16  ;;  %v1424_v22 = vsel %vm1360_vm5, 0.0, %v976_v20  ;;  %v1425_v8 = vsel %vm1361_vm6, 0.0, %v977_v0  ;;  %v917_v13 = vmul.f32 %v2966_v28, %v2634_v27 }
 0x150   :  { %1488 = vst [vmem:[#allocation2 + $0x88] sm:$0xff] %v1424_v22  ;;  %v996_v16 = vadd.f32 %v2587_v59, %v928_v5 }
 0x151   :  { %1489 = vst [vmem:[#allocation2 + $0x90] sm:$0xff] %v1425_v8  ;;  %v2754_v9 = vpop.f32.mrf.mxu2  ;;  %v985_v8 = vadd.f32 %v2587_v59, %v917_v13 }
 0x153   :  { %1338 = vperm.xlu0 %1781, %v1149_v56   ;;  %1341 = vperm.xlu1 %1782, %v1150_v47  }
 0x154   :  { %v1246_v46 = vpop.permute.xlu2 %1245 }
 0x155   :  { %vm1374_vm7 = vcmp.eq.s32.totalorder %v1246_v46, 1  ;;  %v1213_v23 = vpop.permute.xlu0 %1212  ;;  %v1216_v18 = vpop.permute.xlu1 %1215 }
 0x156   :  { %v1438_v12 = vsel %vm1374_vm7, 0.0, %v990_v1  ;;  %vm1363_vm8 = vcmp.eq.s32.totalorder %v1213_v23, 1  ;;  %vm1364_vm9 = vcmp.eq.s32.totalorder %v1216_v18, 1  ;;  %v2968_v1 = vld [vmem:[#allocation38_spill] sm:$0xff]  ;;  %v999_v23 = vadd.f32 %v2587_v59, %v931_v40  ;;  %v2774_v18 = vpop.f32.mrf.mxu3 }
 0x157   :  { %1502 = vst [vmem:[#allocation2 + $0xf8] sm:$0xff] %v1438_v12  ;;  %v1427_v34 = vsel %vm1363_vm8, 0.0, %v979_v52  ;;  %v1428_v54 = vsel %vm1364_vm9, 0.0, %v980_v31  ;;  %v920_v46 = vmul.f32 %v2968_v1, %v2695_v4  ;;  %v921_v52 = vmul.f32 %v2461_v36, %v2716_v11 }
 0x158   :  { %1491 = vst [vmem:[#allocation2 + $0xa0] sm:$0xff] %v1427_v34  ;;  %v934_v11 = vmul.f32 %v2533_v33, %v454_v25  ;;  %v1008_v1 = vadd.f32 %v2587_v59, %v2566_v41  ;;  %v2973_v41 = vld [vmem:[#allocation44_spill] sm:$0xff] }
 0x159   :  { %1492 = vst [vmem:[#allocation2 + $0xa8] sm:$0xff] %v1428_v54  ;;  %v2771_v31 = vpop.f32.mrf.mxu2  ;;  %v988_v34 = vadd.f32 %v2587_v59, %v920_v46  ;;  %v989_v54 = vadd.f32 %v2587_v59, %v921_v52  ;;  %v997_v52 = vadd.f32 %v2587_v59, %v2506_v32  ;;  %v933_v32 = vmul.f32 %v2535_v3, %v2729_v57  ;;  %v2974_v57 = vld [vmem:[#allocation45_spill] sm:$0xff] }
 0x15a   :  { %v946_v3 = vmul.f32 %v2592_v50, %v2760_v2 }
 0x15c   :  { %v1255_v53 = vpop.permute.xlu2 %1254 }
 0x15d   :  { %vm1377_vm10 = vcmp.eq.s32.totalorder %v1255_v53, 1  ;;  %v1222_v20 = vpop.permute.xlu0 %1221  ;;  %v1225_v58 = vpop.permute.xlu1 %1224  ;;  %v1002_v53 = vadd.f32 %v2587_v59, %v934_v11 }
 0x15e   :  { %v1441_v24 = vsel %vm1377_vm10, 0.0, %v993_v62  ;;  %vm1366_vm11 = vcmp.eq.s32.totalorder %v1222_v20, 1  ;;  %vm1367_vm12 = vcmp.eq.s32.totalorder %v1225_v58, 1  ;;  %v2969_v20 = vld [vmem:[#allocation40_spill] sm:$0xff]  ;;  %v2784_v28 = vpop.f32.mrf.mxu3 }
 0x15f   :  { %1505 = vst [vmem:[#allocation2 + $0x110] sm:$0xff] %v1441_v24  ;;  %v1430_v14 = vsel %vm1366_vm11, 0.0, %v982_v17  ;;  %v1431_v0 = vsel %vm1367_vm12, 0.0, %v983_v19  ;;  %v991_v58 = vadd.f32 %v2587_v59, %v2969_v20  ;;  %v2970_v24 = vld [vmem:[#allocation46_spill] sm:$0xff] }
 0x160   :  { %1494 = vst [vmem:[#allocation2 + $0xb8] sm:$0xff] %v1430_v14  ;;  %v992_v14 = vadd.f32 %v2587_v59, %v2970_v24  ;;  %v936_v24 = vmul.f32 %v2549_v38, %v2771_v31 }
 0x161   :  { %1495 = vst [vmem:[#allocation2 + $0xc0] sm:$0xff] %v1431_v0  ;;  %v462_v17 = vpop.f32.mrf.mxu2 }
 0x162   :  { %v937_v7 = vmul.f32 %v2547_v21, %v462_v17  ;;  %v1001_v17 = vadd.f32 %v2587_v59, %v933_v32 }
 0x164   :  { %v1264_v22 = vpop.permute.xlu2 %1263  ;;  %v1005_v15 = vadd.f32 %v2587_v59, %v937_v7 }
 0x165   :  { %vm1380_vm13 = vcmp.eq.s32.totalorder %v1264_v22, 1  ;;  %v1231_v10 = vpop.permute.xlu0 %1230  ;;  %v1234_v30 = vpop.permute.xlu1 %1233  ;;  %v2971_v22 = vld [vmem:[#allocation43_spill] sm:$0xff] }
 0x166   :  { %v1444_v56 = vsel %vm1380_vm13, 0.0, %v996_v16  ;;  %vm1369_vm14 = vcmp.eq.s32.totalorder %v1231_v10, 1  ;;  %vm1370_vm15 = vcmp.eq.s32.totalorder %v1234_v30, 1  ;;  %v492_v40 = vpop.f32.mrf.mxu3 }
 0x167   :  { %1508 = vst [vmem:[#allocation2 + $0x128] sm:$0xff] %v1444_v56  ;;  %v1433_v27 = vsel %vm1369_vm14, 0.0, %v985_v8  ;;  %v1434_v47 = vsel %vm1370_vm15, 0.0, %v986_v39  ;;  %v994_v8 = vadd.f32 %v2587_v59, %v2971_v22  ;;  %v2972_v39 = vld [vmem:[#allocation48_spill] sm:$0xff]  ;;  %v949_v31 = vmul.f32 %v2607_v51, %v492_v40  ;;  %v2976_v22 = vld [vmem:[#allocation47_spill] sm:$0xff] }
 0x168   :  { %1497 = vst [vmem:[#allocation2 + $0xd0] sm:$0xff] %v1433_v27  ;;  %v995_v10 = vadd.f32 %v2587_v59, %v2972_v39 }
 0x169   :  { %1498 = vst [vmem:[#allocation2 + $0xd8] sm:$0xff] %v1434_v47  ;;  %v464_v2 = vpop.f32.mrf.mxu2  ;;  %v1017_v39 = vadd.f32 %v2587_v59, %v949_v31 }
 0x16c   :  { %v1273_v12 = vpop.permute.xlu2 %1272 }
 0x16d   :  { %vm1383_vm0 = vcmp.eq.s32.totalorder %v1273_v12, 1  ;;  %v1240_v26 = vpop.permute.xlu0 %1239  ;;  %v1243_v63 = vpop.permute.xlu1 %1242 }
 0x16e   :  { %v1447_v62 = vsel %vm1383_vm0, 0.0, %v999_v23  ;;  %vm1372_vm1 = vcmp.eq.s32.totalorder %v1240_v26, 1  ;;  %vm1373_vm2 = vcmp.eq.s32.totalorder %v1243_v63, 1  ;;  %v998_v23 = vadd.f32 %v2587_v59, %v2525_v37  ;;  %v2804_v37 = vpop.f32.mrf.mxu3 }
 0x16f   :  { %1511 = vst [vmem:[#allocation2 + $0x140] sm:$0xff] %v1447_v62  ;;  %v1436_v36 = vsel %vm1372_vm1, 0.0, %v988_v34  ;;  %v1437_v4 = vsel %vm1373_vm2, 0.0, %v989_v54  ;;  %v943_v62 = vmul.f32 %v2574_v43, %v2508_v44 }
 0x170   :  { %1500 = vst [vmem:[#allocation2 + $0xe8] sm:$0xff] %v1436_v36  ;;  %v932_v36 = vmul.f32 %v2973_v41, %v2713_v61  ;;  %v1012_v41 = vadd.f32 %v2587_v59, %v2531_v29 }
 0x171   :  { %1501 = vst [vmem:[#allocation2 + $0xf0] sm:$0xff] %v1437_v4  ;;  %v1011_v4 = vadd.f32 %v2587_v59, %v943_v62 }
 0x174   :  { %v1282_v19 = vpop.permute.xlu2 %1281 }
 0x175   :  { %vm1386_vm3 = vcmp.eq.s32.totalorder %v1282_v19, 1  ;;  %v1249_v0 = vpop.permute.xlu0 %1248  ;;  %v1252_v5 = vpop.permute.xlu1 %1251 }
 0x176   :  { %v1450_v13 = vsel %vm1386_vm3, 0.0, %v1002_v53  ;;  %vm1375_vm4 = vcmp.eq.s32.totalorder %v1249_v0, 1  ;;  %vm1376_vm5 = vcmp.eq.s32.totalorder %v1252_v5, 1  ;;  %v1000_v53 = vadd.f32 %v2587_v59, %v932_v36  ;;  %v2816_v0 = vpop.f32.mrf.mxu3 }
 0x177   :  { %1514 = vst [vmem:[#allocation2 + $0x158] sm:$0xff] %v1450_v13  ;;  %v1439_v33 = vsel %vm1375_vm4, 0.0, %v991_v58  ;;  %v1440_v25 = vsel %vm1376_vm5, 0.0, %v992_v14  ;;  %v935_v58 = vmul.f32 %v2974_v57, %v2754_v9  ;;  %v1014_v14 = vadd.f32 %v2587_v59, %v946_v3 }
 0x178   :  { %1503 = vst [vmem:[#allocation2 + $0x100] sm:$0xff] %v1439_v33  ;;  %v1004_v33 = vadd.f32 %v2587_v59, %v936_v24  ;;  %v1013_v36 = vadd.f32 %v2587_v59, %v2596_v48  ;;  %v950_v3 = vmul.f32 %v2558_v49, %v2804_v37 }
 0x179   :  { %1504 = vst [vmem:[#allocation2 + $0x108] sm:$0xff] %v1440_v25  ;;  %v1003_v13 = vadd.f32 %v2587_v59, %v935_v58 }
 0x17c   :  { %v1291_v16 = vpop.permute.xlu2 %1290 }
 0x17d   :  { %vm1389_vm6 = vcmp.eq.s32.totalorder %v1291_v16, 1  ;;  %v1258_v30 = vpop.permute.xlu0 %1257  ;;  %v1261_v56 = vpop.permute.xlu1 %1260 }
 0x17e   :  { %v1453_v27 = vsel %vm1389_vm6, 0.0, %v1005_v15  ;;  %vm1378_vm7 = vcmp.eq.s32.totalorder %v1258_v30, 1  ;;  %vm1379_vm8 = vcmp.eq.s32.totalorder %v1261_v56, 1  ;;  %v2975_v15 = vld [vmem:[#allocation41_spill] sm:$0xff]  ;;  %v499_v51 = vpop.f32.mrf.mxu3 }
 0x17f   :  { %1517 = vst [vmem:[#allocation2 + $0x170] sm:$0xff] %v1453_v27  ;;  %v1442_v47 = vsel %vm1378_vm7, 0.0, %v994_v8  ;;  %v1443_v21 = vsel %vm1379_vm8, 0.0, %v995_v10  ;;  %v939_v16 = vmul.f32 %v2561_v55, %v2975_v15  ;;  %v938_v8 = vmul.f32 %v2976_v22, %v464_v2 }
 0x180   :  { %1506 = vst [vmem:[#allocation2 + $0x118] sm:$0xff] %v1442_v47 }
 0x181   :  { %1507 = vst [vmem:[#allocation2 + $0x120] sm:$0xff] %v1443_v21  ;;  %v1007_v30 = vadd.f32 %v2587_v59, %v939_v16  ;;  %v1006_v56 = vadd.f32 %v2587_v59, %v938_v8 }
 0x184   :  { %v1300_v46 = vpop.permute.xlu2 %1299 }
 0x185   :  { %vm1392_vm9 = vcmp.eq.s32.totalorder %v1300_v46, 1  ;;  %v1267_v12 = vpop.permute.xlu0 %1266  ;;  %v1270_v34 = vpop.permute.xlu1 %1269 }
 0x186   :  { %v1456_v54 = vsel %vm1392_vm9, 0.0, %v1008_v1  ;;  %vm1381_vm10 = vcmp.eq.s32.totalorder %v1267_v12, 1  ;;  %vm1382_vm11 = vcmp.eq.s32.totalorder %v1270_v34, 1  ;;  %v952_v1 = vmul.f32 %v2624_v35, %v499_v51 }
 0x187   :  { %1520 = vst [vmem:[#allocation2 + $0x188] sm:$0xff] %v1456_v54  ;;  %v1445_v26 = vsel %vm1381_vm10, 0.0, %v997_v52  ;;  %v1446_v63 = vsel %vm1382_vm11, 0.0, %v998_v23  ;;  %v2977_v23 = vld [vmem:[#allocation49_spill] sm:$0xff]  ;;  %v1010_v34 = vadd.f32 %v2587_v59, %v2579_v6 }
 0x188   :  { %1509 = vst [vmem:[#allocation2 + $0x130] sm:$0xff] %v1445_v26  ;;  %v1020_v46 = vadd.f32 %v2587_v59, %v952_v1  ;;  %v1009_v12 = vadd.f32 %v2587_v59, %v2977_v23 }
 0x189   :  { %1510 = vst [vmem:[#allocation2 + $0x138] sm:$0xff] %v1446_v63 }
 0x18c   :  { %v1309_v11 = vpop.permute.xlu2 %1308 }
 0x18d   :  { %vm1395_vm12 = vcmp.eq.s32.totalorder %v1309_v11, 1  ;;  %v1276_v19 = vpop.permute.xlu0 %1275  ;;  %v1279_v44 = vpop.permute.xlu1 %1278 }
 0x18e   :  { %v1459_v43 = vsel %vm1395_vm12, 0.0, %v1011_v4  ;;  %vm1384_vm13 = vcmp.eq.s32.totalorder %v1276_v19, 1  ;;  %vm1385_vm14 = vcmp.eq.s32.totalorder %v1279_v44, 1  ;;  %v502_v19 = vpop.f32.mrf.mxu3 }
 0x18f   :  { %1523 = vst [vmem:[#allocation2 + $0x1a0] sm:$0xff] %v1459_v43  ;;  %v1448_v61 = vsel %vm1384_vm13, 0.0, %v1000_v53  ;;  %v1449_v20 = vsel %vm1385_vm14, 0.0, %v1001_v17  ;;  %v947_v53 = vmul.f32 %v2544_v42, %v2774_v18  ;;  %v948_v17 = vmul.f32 %v2609_v60, %v2784_v28 }
 0x190   :  { %1512 = vst [vmem:[#allocation2 + $0x148] sm:$0xff] %v1448_v61  ;;  %v951_v42 = vmul.f32 %v2626_v45, %v2816_v0  ;;  %v1018_v60 = vadd.f32 %v2587_v59, %v950_v3 }
 0x191   :  { %1513 = vst [vmem:[#allocation2 + $0x150] sm:$0xff] %v1449_v20  ;;  %v1015_v29 = vadd.f32 %v2587_v59, %v947_v53  ;;  %v1016_v44 = vadd.f32 %v2587_v59, %v948_v17 }
 0x192   :  { %v1019_v18 = vadd.f32 %v2587_v59, %v951_v42 }
 0x194   :  { %v1318_v5 = vpop.permute.xlu2 %1317 }
 0x195   :  { %vm1398_vm15 = vcmp.eq.s32.totalorder %v1318_v5, 1  ;;  %v1285_v25 = vpop.permute.xlu0 %1284  ;;  %v1288_v50 = vpop.permute.xlu1 %1287  ;;  %v2978_v5 = vld [vmem:[#allocation50_spill] sm:$0xff] }
 0x196   :  { %v1462_v7 = vsel %vm1398_vm15, 0.0, %v1014_v14  ;;  %vm1387_vm0 = vcmp.eq.s32.totalorder %v1285_v25, 1  ;;  %vm1388_vm1 = vcmp.eq.s32.totalorder %v1288_v50, 1  ;;  %v504_v58 = vpop.f32.mrf.mxu3 }
 0x197   :  { %1526 = vst [vmem:[#allocation2 + $0x1b8] sm:$0xff] %v1462_v7  ;;  %v1451_v9 = vsel %vm1387_vm0, 0.0, %v1003_v13  ;;  %v1452_v38 = vsel %vm1388_vm1, 0.0, %v1004_v33  ;;  %v953_v13 = vmul.f32 %v2978_v5, %v502_v19  ;;  %v2979_v33 = vld [vmem:[#allocation6_spill] sm:$0xff] }
 0x198   :  { %1515 = vst [vmem:[#allocation2 + $0x160] sm:$0xff] %v1451_v9  ;;  %v954_v49 = vmul.f32 %v2979_v33, %v504_v58 }
 0x199   :  { %1516 = vst [vmem:[#allocation2 + $0x168] sm:$0xff] %v1452_v38  ;;  %v1021_v45 = vadd.f32 %v2587_v59, %v953_v13 }
 0x19a   :  { %v1022_v37 = vadd.f32 %v2587_v59, %v954_v49 }
 0x19c   :  { %v1327_v10 = vpop.permute.xlu2 %1326 }
 0x19d   :  { %vm1401_vm2 = vcmp.eq.s32.totalorder %v1327_v10, 1  ;;  %v1294_v27 = vpop.permute.xlu0 %1293  ;;  %v1297_v47 = vpop.permute.xlu1 %1296 }
 0x19e   :  { %v1465_v21 = vsel %vm1401_vm2, 0.0, %v1017_v39  ;;  %vm1390_vm3 = vcmp.eq.s32.totalorder %v1294_v27, 1  ;;  %vm1391_vm4 = vcmp.eq.s32.totalorder %v1297_v47, 1 }
 0x19f   :  { %1529 = vst [vmem:[#allocation2 + $0x1d0] sm:$0xff] %v1465_v21  ;;  %v1454_v40 = vsel %vm1390_vm3, 0.0, %v1006_v56  ;;  %v1455_v55 = vsel %vm1391_vm4, 0.0, %v1007_v30 }
 0x1a0   :  { %1518 = vst [vmem:[#allocation2 + $0x178] sm:$0xff] %v1454_v40 }
 0x1a1   :  { %1519 = vst [vmem:[#allocation2 + $0x180] sm:$0xff] %v1455_v55 }
 0x1a4   :  { %v1336_v52 = vpop.permute.xlu2 %1335 }
 0x1a5   :  { %vm1404_vm5 = vcmp.eq.s32.totalorder %v1336_v52, 1  ;;  %v1303_v54 = vpop.permute.xlu0 %1302  ;;  %v1306_v26 = vpop.permute.xlu1 %1305 }
 0x1a6   :  { %v1468_v63 = vsel %vm1404_vm5, 0.0, %v1020_v46  ;;  %vm1393_vm6 = vcmp.eq.s32.totalorder %v1303_v54, 1  ;;  %vm1394_vm7 = vcmp.eq.s32.totalorder %v1306_v26, 1 }
 0x1a7   :  { %1532 = vst [vmem:[#allocation2 + $0x1e8] sm:$0xff] %v1468_v63  ;;  %v1457_v62 = vsel %vm1393_vm6, 0.0, %v1009_v12  ;;  %v1458_v35 = vsel %vm1394_vm7, 0.0, %v1010_v34 }
 0x1a8   :  { %1521 = vst [vmem:[#allocation2 + $0x190] sm:$0xff] %v1457_v62 }
 0x1a9   :  { %1522 = vst [vmem:[#allocation2 + $0x198] sm:$0xff] %v1458_v35 }
 0x1ad   :  { %v1312_v32 = vpop.permute.xlu0 %1311  ;;  %v1315_v4 = vpop.permute.xlu1 %1314 }
 0x1ae   :  { %vm1396_vm8 = vcmp.eq.s32.totalorder %v1312_v32, 1  ;;  %vm1397_vm9 = vcmp.eq.s32.totalorder %v1315_v4, 1 }
 0x1af   :  { %v1460_v6 = vsel %vm1396_vm8, 0.0, %v1012_v41  ;;  %v1461_v11 = vsel %vm1397_vm9, 0.0, %v1013_v36 }
 0x1b0   :  { %1524 = vst [vmem:[#allocation2 + $0x1a8] sm:$0xff] %v1460_v6 }
 0x1b1   :  { %1525 = vst [vmem:[#allocation2 + $0x1b0] sm:$0xff] %v1461_v11 }
 0x1b5   :  { %v1321_v48 = vpop.permute.xlu0 %1320  ;;  %v1324_v43 = vpop.permute.xlu1 %1323 }
 0x1b6   :  { %vm1399_vm10 = vcmp.eq.s32.totalorder %v1321_v48, 1  ;;  %vm1400_vm11 = vcmp.eq.s32.totalorder %v1324_v43, 1 }
 0x1b7   :  { %v1463_v61 = vsel %vm1399_vm10, 0.0, %v1015_v29  ;;  %v1464_v20 = vsel %vm1400_vm11, 0.0, %v1016_v44 }
 0x1b8   :  { %1527 = vst [vmem:[#allocation2 + $0x1c0] sm:$0xff] %v1463_v61 }
 0x1b9   :  { %1528 = vst [vmem:[#allocation2 + $0x1c8] sm:$0xff] %v1464_v20 }
 0x1bd   :  { %v1330_v28 = vpop.permute.xlu0 %1329  ;;  %v1333_v57 = vpop.permute.xlu1 %1332 }
 0x1be   :  { %vm1402_vm12 = vcmp.eq.s32.totalorder %v1330_v28, 1  ;;  %vm1403_vm13 = vcmp.eq.s32.totalorder %v1333_v57, 1 }
 0x1bf   :  { %v1466_v24 = vsel %vm1402_vm12, 0.0, %v1018_v60  ;;  %v1467_v14 = vsel %vm1403_vm13, 0.0, %v1019_v18 }
 0x1c0   :  { %1530 = vst [vmem:[#allocation2 + $0x1d8] sm:$0xff] %v1466_v24 }
 0x1c1   :  { %1531 = vst [vmem:[#allocation2 + $0x1e0] sm:$0xff] %v1467_v14 }
 0x1c5   :  { %v1339_v0 = vpop.permute.xlu0 %1338  ;;  %v1342_v25 = vpop.permute.xlu1 %1341 }
 0x1c6   :  { %vm1405_vm14 = vcmp.eq.s32.totalorder %v1339_v0, 1  ;;  %vm1406_vm15 = vcmp.eq.s32.totalorder %v1342_v25, 1 }
 0x1c7   :  { %v1469_v50 = vsel %vm1405_vm14, 0.0, %v1021_v45  ;;  %v1470_v2 = vsel %vm1406_vm15, 0.0, %v1022_v37 }
 0x1c8   :  { %1533 = vst [vmem:[#allocation2 + $0x1f0] sm:$0xff] %v1469_v50 }
 0x1c9   :  { %1534 = vst [vmem:[#allocation2 + $0x1f8] sm:$0xff] %v1470_v2 }
 0x1ca   :  { %1547 = dma.vmem_to_hbm [thread:$0]  %s1540_s2, 8192, %s1542_s11, [#allocation3], %s1813_s12, %s1813_s12, %s1814_s13  }
 0x1cb   :  { %1809 = dma.done.wait [#allocation3], 8192  }
 0x1cc   :  { %1810 = vsyncadd [#allocation3], 4294959104 }
 0x1cd   :  { %1552 = vsyncpa [#allocation3], 1 }

</bundles_post_ra>
